<compile_context>
chip_gen: v6e
topology: v6e:2x2x1
jax: 0.10.0
libtpu: 0.0.40
codegen_flags: <defaults>
</compile_context>

<pallas_src>
import functools

import jax
import jax.numpy as jnp
from jax.experimental import pallas as pl
from jax.experimental.pallas import tpu as pltpu

FUSED_MAX_ROWS = 512   # above this, the (E, N) one-hot gather/scatter slabs get big
ROW_TILE = 1024        # row tile for the large-graph fallback path (was 256)

# Set to jnp.bfloat16 on v6e/v7x for very large mem-bound graphs (f32 accumulation
# is kept via preferred_element_type); leave f32 on v5e and for exact numerics.
MATMUL_DTYPE = jnp.float32


# ---------------------------------------------------------------------------
# small helpers
# ---------------------------------------------------------------------------
def _relu(x):
    return jnp.maximum(x, 0.0)


def _dot(a, b):
    return jnp.dot(a.astype(MATMUL_DTYPE), b.astype(MATMUL_DTYPE),
                   preferred_element_type=jnp.float32)


def _cosine(a, b, eps=1e-8):
    # torch.nn.CosineSimilarity: dot / max(||a||*||b||, eps)
    #   == dot * rsqrt(max(||a||^2 * ||b||^2, eps^2))   (sqrt is monotonic)
    dot_ab = jnp.sum(a * b, axis=-1, keepdims=True)
    na2 = jnp.sum(a * a, axis=-1, keepdims=True)
    nb2 = jnp.sum(b * b, axis=-1, keepdims=True)
    return dot_ab * jax.lax.rsqrt(jnp.maximum(na2 * nb2, eps * eps))


# ---------------------------------------------------------------------------
# fully-fused forward kernel (small/medium graphs; everything VMEM-resident)
# ---------------------------------------------------------------------------
def _fused_forward_kernel(x1_ref, x2_ref, src_ref, trg_ref, trg_row_ref,
                          w1a_ref, b1a_ref, w1b_ref, b1b_ref,
                          w2a_ref, b2a_ref, w2b_ref, b2b_ref,
                          w0f_ref, w0s1_ref, w0s2_ref, b0_ref, w1e_ref, b1e_ref,
                          we1_ref, be1_ref, wn_ref, bn_ref, we2_ref, be2_ref,
                          wc1_ref, bc1_ref, wc2_ref, bc2_ref,
                          out_ref, *, f0):
    x1 = x1_ref[...]
    x2 = x2_ref[...]
    n = x1.shape[0]
    num_e = src_ref.shape[0]

    # ---- node embedding MLPs -------------------------------------------------
    h1 = _relu(_dot(x1, w1a_ref[...]) + b1a_ref[...])
    h1 = _relu(_dot(h1, w1b_ref[...]) + b1b_ref[...])
    h2 = _relu(_dot(x2, w2a_ref[...]) + b2a_ref[...])
    h2 = _relu(_dot(h2, w2b_ref[...]) + b2b_ref[...])
    h = jnp.concatenate([h1, h2], axis=-1)          # (N, H)
    x_init = jnp.concatenate([x1, x2], axis=-1)     # (N, f0)

    # ---- endpoint gathers as one-hot MXU matmuls (replaces XLA gathers) ------
    col = jax.lax.broadcasted_iota(jnp.int32, (num_e, n), 1)
    oh_src = (col == src_ref[...]).astype(jnp.float32)   # (E, N)
    oh_trg = (col == trg_ref[...]).astype(jnp.float32)   # (E, N)

    g = jnp.concatenate([x_init, h], axis=-1)       # packed [x_init | h], (N, f0+H)
    gs = _dot(oh_src, g)                            # (E, f0+H)
    gt = _dot(oh_trg, g)
    xs0, hs = gs[:, :f0], gs[:, f0:]
    xt0, ht = gt[:, :f0], gt[:, f0:]

    sim1 = _cosine(xs0, xt0)                        # (E, 1)
    sim2 = _cosine(hs, ht)                          # (E, 1)
    abs0 = jnp.abs(xs0 - xt0)
    absx = jnp.abs(hs - ht)

    # ---- edge embedding MLP (single merged dot + two rank-1 similarity adds) -
    feat = jnp.concatenate([abs0, hs, ht, absx], axis=-1)     # (E, f0+3H)
    y = _relu(_dot(feat, w0f_ref[...]) + sim1 * w0s1_ref[...]
              + sim2 * w0s2_ref[...] + b0_ref[...])
    e0 = _relu(_dot(y, w1e_ref[...]) + b1e_ref[...])          # (E, de)

    # ---- message passing (edge -> node -> edge round) ------------------------
    e1 = _relu(_dot(jnp.concatenate([hs, ht, e0], axis=-1), we1_ref[...])
               + be1_ref[...])                                # (E, de)

    # scatter-add at trg via (N, E) one-hot on the MXU (replaces segment_sum)
    row = jax.lax.broadcasted_iota(jnp.int32, (n, num_e), 0)
    oh_scat = (row == trg_row_ref[...]).astype(jnp.float32)   # (N, E)
    agg = _dot(oh_scat, e1)                                   # (N, de)

    hn = _relu(_dot(jnp.concatenate([h, agg], axis=-1), wn_ref[...]) + bn_ref[...])
    hn_s = _dot(oh_src, hn)
    hn_t = _dot(oh_trg, hn)
    e2 = _relu(_dot(jnp.concatenate([hn_s, hn_t, e1], axis=-1), we2_ref[...])
               + be2_ref[...])

    # ---- edge classifier head (no trailing ReLU) ------------------------------
    c = _relu(_dot(e2, wc1_ref[...]) + bc1_ref[...])
    out_ref[...] = _dot(c, wc2_ref[...]) + bc2_ref[...]


# ---------------------------------------------------------------------------
# large-graph fallback kernels (row-tiled, gathers/segment_sum stay in XLA glue)
# ---------------------------------------------------------------------------
def _node_embed_kernel(x1_ref, x2_ref,
                       w1a_ref, b1a_ref, w1b_ref, b1b_ref,
                       w2a_ref, b2a_ref, w2b_ref, b2b_ref, h_ref):
    h1 = _relu(_dot(x1_ref[...], w1a_ref[...]) + b1a_ref[...])
    h1 = _relu(_dot(h1, w1b_ref[...]) + b1b_ref[...])
    h2 = _relu(_dot(x2_ref[...], w2a_ref[...]) + b2a_ref[...])
    h2 = _relu(_dot(h2, w2b_ref[...]) + b2b_ref[...])
    h_ref[...] = jnp.concatenate([h1, h2], axis=-1)   # single full-width store


def _edge_pre_kernel(xs0_ref, xt0_ref, hs_ref, ht_ref,
                     w0f_ref, w0s1_ref, w0s2_ref, b0_ref, w1e_ref, b1e_ref,
                     we1_ref, be1_ref, e1_ref):
    xs0, xt0 = xs0_ref[...], xt0_ref[...]
    hs, ht = hs_ref[...], ht_ref[...]
    sim1 = _cosine(xs0, xt0)
    sim2 = _cosine(hs, ht)
    feat = jnp.concatenate([jnp.abs(xs0 - xt0), hs, ht, jnp.abs(hs - ht)], axis=-1)
    y = _relu(_dot(feat, w0f_ref[...]) + sim1 * w0s1_ref[...]
              + sim2 * w0s2_ref[...] + b0_ref[...])
    e0 = _relu(_dot(y, w1e_ref[...]) + b1e_ref[...])
    e1_ref[...] = _relu(_dot(jnp.concatenate([hs, ht, e0], axis=-1), we1_ref[...])
                        + be1_ref[...])


def _node_update_kernel(h_ref, agg_ref, wn_ref, bn_ref, o_ref):
    o_ref[...] = _relu(_dot(jnp.concatenate([h_ref[...], agg_ref[...]], axis=-1),
                            wn_ref[...]) + bn_ref[...])


def _edge_out_kernel(hns_ref, hnt_ref, e1_ref,
                     we2_ref, be2_ref, wc1_ref, bc1_ref, wc2_ref, bc2_ref, o_ref):
    e2 = _relu(_dot(jnp.concatenate([hns_ref[...], hnt_ref[...], e1_ref[...]], axis=-1),
                    we2_ref[...]) + be2_ref[...])
    c = _relu(_dot(e2, wc1_ref[...]) + bc1_ref[...])
    # TODO(synk): for very large E a lane-dense (1, ROW_TILE) transposed store would
    # avoid masked width-1 vst; kept simple since this path is the fallback only.
    o_ref[...] = _dot(c, wc2_ref[...]) + bc2_ref[...]


def _row_call(kernel, row_args, w_args, out_dim):
    """Row-tiled pallas_call. Small row counts: single whole-array block (no grid).
    Large row counts: 1024-row "parallel" grid with NO padding and NO output slice —
    all kernels are strictly row-independent, so the ragged last block's garbage rows
    never contaminate valid rows and their out-of-bounds writes are dropped."""
    rows = row_args[0].shape[0]
    if rows <= ROW_TILE:
        return pl.pallas_call(
            kernel,
            out_shape=jax.ShapeDtypeStruct((rows, out_dim), jnp.float32),
        )(*row_args, *w_args)

    in_specs = ([pl.BlockSpec((ROW_TILE, a.shape[1]), lambda i: (i, 0)) for a in row_args]
                + [pl.BlockSpec(w.shape, lambda i: (0, 0)) for w in w_args])
    return pl.pallas_call(
        kernel,
        out_shape=jax.ShapeDtypeStruct((rows, out_dim), jnp.float32),
        grid=(pl.cdiv(rows, ROW_TILE),),
        in_specs=in_specs,
        out_specs=pl.BlockSpec((ROW_TILE, out_dim), lambda i: (i, 0)),
        compiler_params=pltpu.CompilerParams(dimension_semantics=("parallel",)),
    )(*row_args, *w_args)


# ---------------------------------------------------------------------------
# parameters (deterministic synthetic init)
# ---------------------------------------------------------------------------
def _linear_params(key, din, dout):
    w = jax.random.normal(key, (din, dout), jnp.float32) * (1.0 / jnp.sqrt(din))
    b = jnp.zeros((1, dout), jnp.float32)
    return w, b


def init_params(key, f1, f2, h1, h2, de):
    keys = jax.random.split(key, 12)
    H = h1 + h2
    f0 = f1 + f2
    p = {}
    p["hand_w1"], p["hand_b1"] = _linear_params(keys[0], f1, h1)
    p["hand_w2"], p["hand_b2"] = _linear_params(keys[1], h1, h1)
    p["learn_w1"], p["learn_b1"] = _linear_params(keys[2], f2, h2)
    p["learn_w2"], p["learn_b2"] = _linear_params(keys[3], h2, h2)

    # edge_emb layer 1 over cat([abs0, sim1, hs, ht, absx, sim2])  (ein -> 2*de).
    # Rows are reordered so [abs0|hs|ht|absx] is one contiguous K = f0+3H dot and the
    # two similarity scalars become rank-1 adds (merged-dot layout).
    ein = f0 + 1 + 3 * H + 1
    w0, p["e0_b"] = _linear_params(keys[4], ein, 2 * de)
    o = 0
    w_abs = w0[o:o + f0]; o += f0
    w_s1 = w0[o:o + 1]; o += 1
    w_hs = w0[o:o + H]; o += H
    w_ht = w0[o:o + H]; o += H
    w_ax = w0[o:o + H]; o += H
    w_s2 = w0[o:o + 1]; o += 1
    p["e0_feat"] = jnp.concatenate([w_abs, w_hs, w_ht, w_ax], axis=0)
    p["e0_s1"], p["e0_s2"] = w_s1, w_s2
    p["e1_w"], p["e1_b"] = _linear_params(keys[5], 2 * de, de)

    # TODO(synk): the real message-passing class is resolved dynamically from config
    # (getattr(basic_gnn_with_edge, message_passing.target)) and is not given; we keep
    # one edge-conditioned MPNN round (edge -> node -> edge, returns edge features).
    p["mp1_w"], p["mp1_b"] = _linear_params(keys[6], 2 * H + de, de)
    p["mpn_w"], p["mpn_b"] = _linear_params(keys[7], H + de, H)
    p["mp2_w"], p["mp2_b"] = _linear_params(keys[8], 2 * H + de, de)

    p["cls_w1"], p["cls_b1"] = _linear_params(keys[9], de, de)
    p["cls_w2"], p["cls_b2"] = _linear_params(keys[10], de, 1)
    return p


# ---------------------------------------------------------------------------
# forward pass
# ---------------------------------------------------------------------------
def net_new_new_forward(params, x, edge_index, edge_feat=None):
    p = params
    x1, x2 = x
    n = x1.shape[0]
    num_e = edge_index.shape[1]
    f0 = x1.shape[1] + x2.shape[1]
    h_dim = p["hand_w2"].shape[1] + p["learn_w2"].shape[1]
    de = p["e1_w"].shape[1]

    weights = [
        p["hand_w1"], p["hand_b1"], p["hand_w2"], p["hand_b2"],
        p["learn_w1"], p["learn_b1"], p["learn_w2"], p["learn_b2"],
        p["e0_feat"], p["e0_s1"], p["e0_s2"], p["e0_b"], p["e1_w"], p["e1_b"],
        p["mp1_w"], p["mp1_b"], p["mpn_w"], p["mpn_b"], p["mp2_w"], p["mp2_b"],
        p["cls_w1"], p["cls_b1"], p["cls_w2"], p["cls_b2"],
    ]

    # ---- fully fused path: one kernel, one dispatch, everything in VMEM ------
    if n <= FUSED_MAX_ROWS and num_e <= FUSED_MAX_ROWS:
        src_col = edge_index[0].reshape(num_e, 1).astype(jnp.int32)
        trg_col = edge_index[1].reshape(num_e, 1).astype(jnp.int32)
        trg_row = edge_index[1].reshape(1, num_e).astype(jnp.int32)
        out = pl.pallas_call(
            functools.partial(_fused_forward_kernel, f0=f0),
            out_shape=jax.ShapeDtypeStruct((num_e, 1), jnp.float32),
        )(x1, x2, src_col, trg_col, trg_row, *weights)
        return jnp.squeeze(out, axis=-1)

    # ---- large-graph fallback: 4 row-tiled kernels + XLA gather glue ---------
    h = _row_call(
        _node_embed_kernel, [x1, x2],
        [p["hand_w1"], p["hand_b1"], p["hand_w2"], p["hand_b2"],
         p["learn_w1"], p["learn_b1"], p["learn_w2"], p["learn_b2"]],
        h_dim)

    x_init = jnp.concatenate([x1, x2], axis=-1)
    src, trg = edge_index[0], edge_index[1]
    # TODO(synk): endpoint gathers + segment_sum remain XLA glue on the huge-graph
    # path (data-dependent indexing over >512 rows); could be fused via scalar-prefetch
    # DMA gather if this path becomes hot.
    xs0, xt0 = x_init[src], x_init[trg]
    hs, ht = h[src], h[trg]

    e1 = _row_call(
        _edge_pre_kernel, [xs0, xt0, hs, ht],
        [p["e0_feat"], p["e0_s1"], p["e0_s2"], p["e0_b"], p["e1_w"], p["e1_b"],
         p["mp1_w"], p["mp1_b"]],
        de)

    agg = jax.ops.segment_sum(e1, trg, num_segments=n)

    h_new = _row_call(_node_update_kernel, [h, agg], [p["mpn_w"], p["mpn_b"]], h_dim)

    out = _row_call(
        _edge_out_kernel, [h_new[src], h_new[trg], e1],
        [p["mp2_w"], p["mp2_b"], p["cls_w1"], p["cls_b1"], p["cls_w2"], p["cls_b2"]],
        1)
    return jnp.squeeze(out, axis=-1)


# ---------------------------------------------------------------------------
# demo
# ---------------------------------------------------------------------------
if __name__ == "__main__":
    key = jax.random.PRNGKey(0)
    k_x1, k_x2, k_ei, k_ef, k_p = jax.random.split(key, 5)

    N, E = 16, 32
    F1, F2 = 6, 10            # handcrafted / learned node feature dims
    H1, H2, DE = 16, 16, 32   # node embedding dims, edge embedding dim

    x1 = jax.random.normal(k_x1, (N, F1), jnp.float32)
    x2 = jax.random.normal(k_x2, (N, F2), jnp.float32)
    edge_index = jax.random.randint(k_ei, (2, E), 0, N)
    edge_feat = jax.random.normal(k_ef, (E, 4), jnp.float32)  # accepted but unused, as in reference

    params = init_params(k_p, F1, F2, H1, H2, DE)

    fwd = jax.jit(net_new_new_forward)
    out = fwd(params, (x1, x2), edge_index, edge_feat)
    out = jax.block_until_ready(out)
    assert out.shape == (E,), out.shape
    print("KERNEL_OK")
</pallas_src>

<mosaic_0001>
module attributes {stable_mosaic.version = 11 : i64} {
  func.func @_fused_forward_kernel(%arg0: memref<16x6xf32, #tpu.memory_space<vmem>>, %arg1: memref<16x10xf32, #tpu.memory_space<vmem>>, %arg2: memref<32x1xi32, #tpu.memory_space<vmem>>, %arg3: memref<32x1xi32, #tpu.memory_space<vmem>>, %arg4: memref<1x32xi32, #tpu.memory_space<vmem>>, %arg5: memref<6x16xf32, #tpu.memory_space<vmem>>, %arg6: memref<1x16xf32, #tpu.memory_space<vmem>>, %arg7: memref<16x16xf32, #tpu.memory_space<vmem>>, %arg8: memref<1x16xf32, #tpu.memory_space<vmem>>, %arg9: memref<10x16xf32, #tpu.memory_space<vmem>>, %arg10: memref<1x16xf32, #tpu.memory_space<vmem>>, %arg11: memref<16x16xf32, #tpu.memory_space<vmem>>, %arg12: memref<1x16xf32, #tpu.memory_space<vmem>>, %arg13: memref<112x64xf32, #tpu.memory_space<vmem>>, %arg14: memref<1x64xf32, #tpu.memory_space<vmem>>, %arg15: memref<1x64xf32, #tpu.memory_space<vmem>>, %arg16: memref<1x64xf32, #tpu.memory_space<vmem>>, %arg17: memref<64x32xf32, #tpu.memory_space<vmem>>, %arg18: memref<1x32xf32, #tpu.memory_space<vmem>>, %arg19: memref<96x32xf32, #tpu.memory_space<vmem>>, %arg20: memref<1x32xf32, #tpu.memory_space<vmem>>, %arg21: memref<64x32xf32, #tpu.memory_space<vmem>>, %arg22: memref<1x32xf32, #tpu.memory_space<vmem>>, %arg23: memref<96x32xf32, #tpu.memory_space<vmem>>, %arg24: memref<1x32xf32, #tpu.memory_space<vmem>>, %arg25: memref<32x32xf32, #tpu.memory_space<vmem>>, %arg26: memref<1x32xf32, #tpu.memory_space<vmem>>, %arg27: memref<32x1xf32, #tpu.memory_space<vmem>>, %arg28: memref<1x1xf32, #tpu.memory_space<vmem>>, %arg29: memref<32x1xf32, #tpu.memory_space<vmem>>) attributes {dimension_semantics = [], scalar_prefetch = 0 : i64, scratch_operands = 0 : i64, tpu.core_type = #tpu.core_type<tc>} {
    %c0 = arith.constant 0 : index
    %c0_0 = arith.constant 0 : index
    %0 = vector.load %arg0[%c0, %c0_0] : memref<16x6xf32, #tpu.memory_space<vmem>>, vector<16x6xf32>
    %c0_1 = arith.constant 0 : index
    %c0_2 = arith.constant 0 : index
    %1 = vector.load %arg1[%c0_1, %c0_2] : memref<16x10xf32, #tpu.memory_space<vmem>>, vector<16x10xf32>
    %c0_3 = arith.constant 0 : index
    %c0_4 = arith.constant 0 : index
    %2 = vector.load %arg5[%c0_3, %c0_4] : memref<6x16xf32, #tpu.memory_space<vmem>>, vector<6x16xf32>
    %cst = arith.constant dense<0.000000e+00> : vector<16x16xf32>
    %3 = tpu.matmul %0, %2, %cst {dimension_numbers = #tpu.dot_dimension_numbers<[1], [0], [0], [1], [0, 0, 1, 1], [], []>} : vector<16x6xf32>, vector<6x16xf32>, vector<16x16xf32> -> vector<16x16xf32>
    %c0_5 = arith.constant 0 : index
    %c0_6 = arith.constant 0 : index
    %4 = vector.load %arg6[%c0_5, %c0_6] : memref<1x16xf32, #tpu.memory_space<vmem>>, vector<1x16xf32>
    %5 = vector.broadcast %4 : vector<1x16xf32> to vector<16x16xf32>
    %6 = arith.addf %3, %5 : vector<16x16xf32>
    %cst_7 = arith.constant 0.000000e+00 : f32
    %7 = vector.broadcast %cst_7 : f32 to vector<16x16xf32>
    %8 = arith.maximumf %6, %7 : vector<16x16xf32>
    %c0_8 = arith.constant 0 : index
    %c0_9 = arith.constant 0 : index
    %9 = vector.load %arg7[%c0_8, %c0_9] : memref<16x16xf32, #tpu.memory_space<vmem>>, vector<16x16xf32>
    %cst_10 = arith.constant dense<0.000000e+00> : vector<16x16xf32>
    %10 = tpu.matmul %8, %9, %cst_10 {dimension_numbers = #tpu.dot_dimension_numbers<[1], [0], [0], [1], [0, 0, 1, 1], [], []>} : vector<16x16xf32>, vector<16x16xf32>, vector<16x16xf32> -> vector<16x16xf32>
    %c0_11 = arith.constant 0 : index
    %c0_12 = arith.constant 0 : index
    %11 = vector.load %arg8[%c0_11, %c0_12] : memref<1x16xf32, #tpu.memory_space<vmem>>, vector<1x16xf32>
    %12 = vector.broadcast %11 : vector<1x16xf32> to vector<16x16xf32>
    %13 = arith.addf %10, %12 : vector<16x16xf32>
    %cst_13 = arith.constant 0.000000e+00 : f32
    %14 = vector.broadcast %cst_13 : f32 to vector<16x16xf32>
    %15 = arith.maximumf %13, %14 : vector<16x16xf32>
    %c0_14 = arith.constant 0 : index
    %c0_15 = arith.constant 0 : index
    %16 = vector.load %arg9[%c0_14, %c0_15] : memref<10x16xf32, #tpu.memory_space<vmem>>, vector<10x16xf32>
    %cst_16 = arith.constant dense<0.000000e+00> : vector<16x16xf32>
    %17 = tpu.matmul %1, %16, %cst_16 {dimension_numbers = #tpu.dot_dimension_numbers<[1], [0], [0], [1], [0, 0, 1, 1], [], []>} : vector<16x10xf32>, vector<10x16xf32>, vector<16x16xf32> -> vector<16x16xf32>
    %c0_17 = arith.constant 0 : index
    %c0_18 = arith.constant 0 : index
    %18 = vector.load %arg10[%c0_17, %c0_18] : memref<1x16xf32, #tpu.memory_space<vmem>>, vector<1x16xf32>
    %19 = vector.broadcast %18 : vector<1x16xf32> to vector<16x16xf32>
    %20 = arith.addf %17, %19 : vector<16x16xf32>
    %cst_19 = arith.constant 0.000000e+00 : f32
    %21 = vector.broadcast %cst_19 : f32 to vector<16x16xf32>
    %22 = arith.maximumf %20, %21 : vector<16x16xf32>
    %c0_20 = arith.constant 0 : index
    %c0_21 = arith.constant 0 : index
    %23 = vector.load %arg11[%c0_20, %c0_21] : memref<16x16xf32, #tpu.memory_space<vmem>>, vector<16x16xf32>
    %cst_22 = arith.constant dense<0.000000e+00> : vector<16x16xf32>
    %24 = tpu.matmul %22, %23, %cst_22 {dimension_numbers = #tpu.dot_dimension_numbers<[1], [0], [0], [1], [0, 0, 1, 1], [], []>} : vector<16x16xf32>, vector<16x16xf32>, vector<16x16xf32> -> vector<16x16xf32>
    %c0_23 = arith.constant 0 : index
    %c0_24 = arith.constant 0 : index
    %25 = vector.load %arg12[%c0_23, %c0_24] : memref<1x16xf32, #tpu.memory_space<vmem>>, vector<1x16xf32>
    %26 = vector.broadcast %25 : vector<1x16xf32> to vector<16x16xf32>
    %27 = arith.addf %24, %26 : vector<16x16xf32>
    %cst_25 = arith.constant 0.000000e+00 : f32
    %28 = vector.broadcast %cst_25 : f32 to vector<16x16xf32>
    %29 = arith.maximumf %27, %28 : vector<16x16xf32>
    %30 = tpu.concatenate %15, %29 in 1 : vector<16x16xf32>, vector<16x16xf32> -> vector<16x32xf32>
    %31 = tpu.concatenate %0, %1 in 1 : vector<16x6xf32>, vector<16x10xf32> -> vector<16x16xf32>
    %32 = tpu.iota {dimensions = array<i32: 1>} : vector<32x16xi32>
    %c0_26 = arith.constant 0 : index
    %c0_27 = arith.constant 0 : index
    %33 = vector.load %arg2[%c0_26, %c0_27] : memref<32x1xi32, #tpu.memory_space<vmem>>, vector<32x1xi32>
    %34 = vector.broadcast %33 : vector<32x1xi32> to vector<32x16xi32>
    %35 = arith.cmpi eq, %32, %34 : vector<32x16xi32>
    %36 = arith.extui %35 : vector<32x16xi1> to vector<32x16xi32>
    %37 = arith.sitofp %36 : vector<32x16xi32> to vector<32x16xf32>
    %c0_28 = arith.constant 0 : index
    %c0_29 = arith.constant 0 : index
    %38 = vector.load %arg3[%c0_28, %c0_29] : memref<32x1xi32, #tpu.memory_space<vmem>>, vector<32x1xi32>
    %39 = vector.broadcast %38 : vector<32x1xi32> to vector<32x16xi32>
    %40 = arith.cmpi eq, %32, %39 : vector<32x16xi32>
    %41 = arith.extui %40 : vector<32x16xi1> to vector<32x16xi32>
    %42 = arith.sitofp %41 : vector<32x16xi32> to vector<32x16xf32>
    %43 = tpu.concatenate %31, %30 in 1 : vector<16x16xf32>, vector<16x32xf32> -> vector<16x48xf32>
    %cst_30 = arith.constant dense<0.000000e+00> : vector<32x48xf32>
    %44 = tpu.matmul %37, %43, %cst_30 {dimension_numbers = #tpu.dot_dimension_numbers<[1], [0], [0], [1], [0, 0, 1, 1], [], []>} : vector<32x16xf32>, vector<16x48xf32>, vector<32x48xf32> -> vector<32x48xf32>
    %cst_31 = arith.constant dense<0.000000e+00> : vector<32x48xf32>
    %45 = tpu.matmul %42, %43, %cst_31 {dimension_numbers = #tpu.dot_dimension_numbers<[1], [0], [0], [1], [0, 0, 1, 1], [], []>} : vector<32x16xf32>, vector<16x48xf32>, vector<32x48xf32> -> vector<32x48xf32>
    %46 = vector.extract_strided_slice %44 {offsets = [0, 0], sizes = [32, 16], strides = [1, 1]} : vector<32x48xf32> to vector<32x16xf32>
    %47 = vector.extract_strided_slice %44 {offsets = [0, 16], sizes = [32, 32], strides = [1, 1]} : vector<32x48xf32> to vector<32x32xf32>
    %48 = vector.extract_strided_slice %45 {offsets = [0, 0], sizes = [32, 16], strides = [1, 1]} : vector<32x48xf32> to vector<32x16xf32>
    %49 = vector.extract_strided_slice %45 {offsets = [0, 16], sizes = [32, 32], strides = [1, 1]} : vector<32x48xf32> to vector<32x32xf32>
    %50 = arith.mulf %46, %48 : vector<32x16xf32>
    %cst_32 = arith.constant dense<0.000000e+00> : vector<32xf32>
    %51 = vector.multi_reduction <add>, %50, %cst_32 [1] : vector<32x16xf32> to vector<32xf32>
    %52 = vector.shape_cast %51 : vector<32xf32> to vector<32x1xf32>
    %53 = arith.mulf %46, %46 : vector<32x16xf32>
    %cst_33 = arith.constant dense<0.000000e+00> : vector<32xf32>
    %54 = vector.multi_reduction <add>, %53, %cst_33 [1] : vector<32x16xf32> to vector<32xf32>
    %55 = vector.shape_cast %54 : vector<32xf32> to vector<32x1xf32>
    %56 = arith.mulf %48, %48 : vector<32x16xf32>
    %cst_34 = arith.constant dense<0.000000e+00> : vector<32xf32>
    %57 = vector.multi_reduction <add>, %56, %cst_34 [1] : vector<32x16xf32> to vector<32xf32>
    %58 = vector.shape_cast %57 : vector<32xf32> to vector<32x1xf32>
    %59 = arith.mulf %55, %58 : vector<32x1xf32>
    %cst_35 = arith.constant 1.000000e-16 : f32
    %60 = vector.broadcast %cst_35 : f32 to vector<32x1xf32>
    %61 = arith.maximumf %59, %60 : vector<32x1xf32>
    %62 = math.rsqrt %61 : vector<32x1xf32>
    %63 = arith.mulf %52, %62 : vector<32x1xf32>
    %64 = arith.mulf %47, %49 : vector<32x32xf32>
    %cst_36 = arith.constant dense<0.000000e+00> : vector<32xf32>
    %65 = vector.multi_reduction <add>, %64, %cst_36 [1] : vector<32x32xf32> to vector<32xf32>
    %66 = vector.shape_cast %65 : vector<32xf32> to vector<32x1xf32>
    %67 = arith.mulf %47, %47 : vector<32x32xf32>
    %cst_37 = arith.constant dense<0.000000e+00> : vector<32xf32>
    %68 = vector.multi_reduction <add>, %67, %cst_37 [1] : vector<32x32xf32> to vector<32xf32>
    %69 = vector.shape_cast %68 : vector<32xf32> to vector<32x1xf32>
    %70 = arith.mulf %49, %49 : vector<32x32xf32>
    %cst_38 = arith.constant dense<0.000000e+00> : vector<32xf32>
    %71 = vector.multi_reduction <add>, %70, %cst_38 [1] : vector<32x32xf32> to vector<32xf32>
    %72 = vector.shape_cast %71 : vector<32xf32> to vector<32x1xf32>
    %73 = arith.mulf %69, %72 : vector<32x1xf32>
    %cst_39 = arith.constant 1.000000e-16 : f32
    %74 = vector.broadcast %cst_39 : f32 to vector<32x1xf32>
    %75 = arith.maximumf %73, %74 : vector<32x1xf32>
    %76 = math.rsqrt %75 : vector<32x1xf32>
    %77 = arith.mulf %66, %76 : vector<32x1xf32>
    %78 = arith.subf %46, %48 : vector<32x16xf32>
    %79 = math.absf %78 : vector<32x16xf32>
    %80 = arith.subf %47, %49 : vector<32x32xf32>
    %81 = math.absf %80 : vector<32x32xf32>
    %82 = tpu.concatenate %79, %47, %49, %81 in 1 : vector<32x16xf32>, vector<32x32xf32>, vector<32x32xf32>, vector<32x32xf32> -> vector<32x112xf32>
    %c0_40 = arith.constant 0 : index
    %c0_41 = arith.constant 0 : index
    %83 = vector.load %arg13[%c0_40, %c0_41] : memref<112x64xf32, #tpu.memory_space<vmem>>, vector<112x64xf32>
    %cst_42 = arith.constant dense<0.000000e+00> : vector<32x64xf32>
    %84 = tpu.matmul %82, %83, %cst_42 {dimension_numbers = #tpu.dot_dimension_numbers<[1], [0], [0], [1], [0, 0, 1, 1], [], []>} : vector<32x112xf32>, vector<112x64xf32>, vector<32x64xf32> -> vector<32x64xf32>
    %c0_43 = arith.constant 0 : index
    %c0_44 = arith.constant 0 : index
    %85 = vector.load %arg14[%c0_43, %c0_44] : memref<1x64xf32, #tpu.memory_space<vmem>>, vector<1x64xf32>
    %86 = vector.broadcast %63 : vector<32x1xf32> to vector<32x64xf32>
    %87 = vector.broadcast %85 : vector<1x64xf32> to vector<32x64xf32>
    %88 = arith.mulf %86, %87 : vector<32x64xf32>
    %89 = arith.addf %84, %88 : vector<32x64xf32>
    %c0_45 = arith.constant 0 : index
    %c0_46 = arith.constant 0 : index
    %90 = vector.load %arg15[%c0_45, %c0_46] : memref<1x64xf32, #tpu.memory_space<vmem>>, vector<1x64xf32>
    %91 = vector.broadcast %77 : vector<32x1xf32> to vector<32x64xf32>
    %92 = vector.broadcast %90 : vector<1x64xf32> to vector<32x64xf32>
    %93 = arith.mulf %91, %92 : vector<32x64xf32>
    %94 = arith.addf %89, %93 : vector<32x64xf32>
    %c0_47 = arith.constant 0 : index
    %c0_48 = arith.constant 0 : index
    %95 = vector.load %arg16[%c0_47, %c0_48] : memref<1x64xf32, #tpu.memory_space<vmem>>, vector<1x64xf32>
    %96 = vector.broadcast %95 : vector<1x64xf32> to vector<32x64xf32>
    %97 = arith.addf %94, %96 : vector<32x64xf32>
    %cst_49 = arith.constant 0.000000e+00 : f32
    %98 = vector.broadcast %cst_49 : f32 to vector<32x64xf32>
    %99 = arith.maximumf %97, %98 : vector<32x64xf32>
    %c0_50 = arith.constant 0 : index
    %c0_51 = arith.constant 0 : index
    %100 = vector.load %arg17[%c0_50, %c0_51] : memref<64x32xf32, #tpu.memory_space<vmem>>, vector<64x32xf32>
    %cst_52 = arith.constant dense<0.000000e+00> : vector<32x32xf32>
    %101 = tpu.matmul %99, %100, %cst_52 {dimension_numbers = #tpu.dot_dimension_numbers<[1], [0], [0], [1], [0, 0, 1, 1], [], []>} : vector<32x64xf32>, vector<64x32xf32>, vector<32x32xf32> -> vector<32x32xf32>
    %c0_53 = arith.constant 0 : index
    %c0_54 = arith.constant 0 : index
    %102 = vector.load %arg18[%c0_53, %c0_54] : memref<1x32xf32, #tpu.memory_space<vmem>>, vector<1x32xf32>
    %103 = vector.broadcast %102 : vector<1x32xf32> to vector<32x32xf32>
    %104 = arith.addf %101, %103 : vector<32x32xf32>
    %cst_55 = arith.constant 0.000000e+00 : f32
    %105 = vector.broadcast %cst_55 : f32 to vector<32x32xf32>
    %106 = arith.maximumf %104, %105 : vector<32x32xf32>
    %107 = tpu.concatenate %47, %49, %106 in 1 : vector<32x32xf32>, vector<32x32xf32>, vector<32x32xf32> -> vector<32x96xf32>
    %c0_56 = arith.constant 0 : index
    %c0_57 = arith.constant 0 : index
    %108 = vector.load %arg19[%c0_56, %c0_57] : memref<96x32xf32, #tpu.memory_space<vmem>>, vector<96x32xf32>
    %cst_58 = arith.constant dense<0.000000e+00> : vector<32x32xf32>
    %109 = tpu.matmul %107, %108, %cst_58 {dimension_numbers = #tpu.dot_dimension_numbers<[1], [0], [0], [1], [0, 0, 1, 1], [], []>} : vector<32x96xf32>, vector<96x32xf32>, vector<32x32xf32> -> vector<32x32xf32>
    %c0_59 = arith.constant 0 : index
    %c0_60 = arith.constant 0 : index
    %110 = vector.load %arg20[%c0_59, %c0_60] : memref<1x32xf32, #tpu.memory_space<vmem>>, vector<1x32xf32>
    %111 = vector.broadcast %110 : vector<1x32xf32> to vector<32x32xf32>
    %112 = arith.addf %109, %111 : vector<32x32xf32>
    %cst_61 = arith.constant 0.000000e+00 : f32
    %113 = vector.broadcast %cst_61 : f32 to vector<32x32xf32>
    %114 = arith.maximumf %112, %113 : vector<32x32xf32>
    %115 = tpu.iota {dimensions = array<i32: 0>} : vector<16x32xi32>
    %c0_62 = arith.constant 0 : index
    %c0_63 = arith.constant 0 : index
    %116 = vector.load %arg4[%c0_62, %c0_63] : memref<1x32xi32, #tpu.memory_space<vmem>>, vector<1x32xi32>
    %117 = vector.broadcast %116 : vector<1x32xi32> to vector<16x32xi32>
    %118 = arith.cmpi eq, %115, %117 : vector<16x32xi32>
    %119 = arith.extui %118 : vector<16x32xi1> to vector<16x32xi32>
    %120 = arith.sitofp %119 : vector<16x32xi32> to vector<16x32xf32>
    %cst_64 = arith.constant dense<0.000000e+00> : vector<16x32xf32>
    %121 = tpu.matmul %120, %114, %cst_64 {dimension_numbers = #tpu.dot_dimension_numbers<[1], [0], [0], [1], [0, 0, 1, 1], [], []>} : vector<16x32xf32>, vector<32x32xf32>, vector<16x32xf32> -> vector<16x32xf32>
    %122 = tpu.concatenate %30, %121 in 1 : vector<16x32xf32>, vector<16x32xf32> -> vector<16x64xf32>
    %c0_65 = arith.constant 0 : index
    %c0_66 = arith.constant 0 : index
    %123 = vector.load %arg21[%c0_65, %c0_66] : memref<64x32xf32, #tpu.memory_space<vmem>>, vector<64x32xf32>
    %cst_67 = arith.constant dense<0.000000e+00> : vector<16x32xf32>
    %124 = tpu.matmul %122, %123, %cst_67 {dimension_numbers = #tpu.dot_dimension_numbers<[1], [0], [0], [1], [0, 0, 1, 1], [], []>} : vector<16x64xf32>, vector<64x32xf32>, vector<16x32xf32> -> vector<16x32xf32>
    %c0_68 = arith.constant 0 : index
    %c0_69 = arith.constant 0 : index
    %125 = vector.load %arg22[%c0_68, %c0_69] : memref<1x32xf32, #tpu.memory_space<vmem>>, vector<1x32xf32>
    %126 = vector.broadcast %125 : vector<1x32xf32> to vector<16x32xf32>
    %127 = arith.addf %124, %126 : vector<16x32xf32>
    %cst_70 = arith.constant 0.000000e+00 : f32
    %128 = vector.broadcast %cst_70 : f32 to vector<16x32xf32>
    %129 = arith.maximumf %127, %128 : vector<16x32xf32>
    %cst_71 = arith.constant dense<0.000000e+00> : vector<32x32xf32>
    %130 = tpu.matmul %37, %129, %cst_71 {dimension_numbers = #tpu.dot_dimension_numbers<[1], [0], [0], [1], [0, 0, 1, 1], [], []>} : vector<32x16xf32>, vector<16x32xf32>, vector<32x32xf32> -> vector<32x32xf32>
    %cst_72 = arith.constant dense<0.000000e+00> : vector<32x32xf32>
    %131 = tpu.matmul %42, %129, %cst_72 {dimension_numbers = #tpu.dot_dimension_numbers<[1], [0], [0], [1], [0, 0, 1, 1], [], []>} : vector<32x16xf32>, vector<16x32xf32>, vector<32x32xf32> -> vector<32x32xf32>
    %132 = tpu.concatenate %130, %131, %114 in 1 : vector<32x32xf32>, vector<32x32xf32>, vector<32x32xf32> -> vector<32x96xf32>
    %c0_73 = arith.constant 0 : index
    %c0_74 = arith.constant 0 : index
    %133 = vector.load %arg23[%c0_73, %c0_74] : memref<96x32xf32, #tpu.memory_space<vmem>>, vector<96x32xf32>
    %cst_75 = arith.constant dense<0.000000e+00> : vector<32x32xf32>
    %134 = tpu.matmul %132, %133, %cst_75 {dimension_numbers = #tpu.dot_dimension_numbers<[1], [0], [0], [1], [0, 0, 1, 1], [], []>} : vector<32x96xf32>, vector<96x32xf32>, vector<32x32xf32> -> vector<32x32xf32>
    %c0_76 = arith.constant 0 : index
    %c0_77 = arith.constant 0 : index
    %135 = vector.load %arg24[%c0_76, %c0_77] : memref<1x32xf32, #tpu.memory_space<vmem>>, vector<1x32xf32>
    %136 = vector.broadcast %135 : vector<1x32xf32> to vector<32x32xf32>
    %137 = arith.addf %134, %136 : vector<32x32xf32>
    %cst_78 = arith.constant 0.000000e+00 : f32
    %138 = vector.broadcast %cst_78 : f32 to vector<32x32xf32>
    %139 = arith.maximumf %137, %138 : vector<32x32xf32>
    %c0_79 = arith.constant 0 : index
    %c0_80 = arith.constant 0 : index
    %140 = vector.load %arg25[%c0_79, %c0_80] : memref<32x32xf32, #tpu.memory_space<vmem>>, vector<32x32xf32>
    %cst_81 = arith.constant dense<0.000000e+00> : vector<32x32xf32>
    %141 = tpu.matmul %139, %140, %cst_81 {dimension_numbers = #tpu.dot_dimension_numbers<[1], [0], [0], [1], [0, 0, 1, 1], [], []>} : vector<32x32xf32>, vector<32x32xf32>, vector<32x32xf32> -> vector<32x32xf32>
    %c0_82 = arith.constant 0 : index
    %c0_83 = arith.constant 0 : index
    %142 = vector.load %arg26[%c0_82, %c0_83] : memref<1x32xf32, #tpu.memory_space<vmem>>, vector<1x32xf32>
    %143 = vector.broadcast %142 : vector<1x32xf32> to vector<32x32xf32>
    %144 = arith.addf %141, %143 : vector<32x32xf32>
    %cst_84 = arith.constant 0.000000e+00 : f32
    %145 = vector.broadcast %cst_84 : f32 to vector<32x32xf32>
    %146 = arith.maximumf %144, %145 : vector<32x32xf32>
    %c0_85 = arith.constant 0 : index
    %c0_86 = arith.constant 0 : index
    %147 = vector.load %arg27[%c0_85, %c0_86] : memref<32x1xf32, #tpu.memory_space<vmem>>, vector<32x1xf32>
    %cst_87 = arith.constant dense<0.000000e+00> : vector<32x1xf32>
    %148 = tpu.matmul %146, %147, %cst_87 {dimension_numbers = #tpu.dot_dimension_numbers<[1], [0], [0], [1], [0, 0, 1, 1], [], []>} : vector<32x32xf32>, vector<32x1xf32>, vector<32x1xf32> -> vector<32x1xf32>
    %c0_88 = arith.constant 0 : index
    %c0_89 = arith.constant 0 : index
    %149 = vector.load %arg28[%c0_88, %c0_89] : memref<1x1xf32, #tpu.memory_space<vmem>>, vector<1x1xf32>
    %150 = vector.broadcast %149 : vector<1x1xf32> to vector<32x1xf32>
    %151 = arith.addf %148, %150 : vector<32x1xf32>
    %c0_90 = arith.constant 0 : index
    %c0_91 = arith.constant 0 : index
    %152 = vector.load %arg29[%c0_90, %c0_91] : memref<32x1xf32, #tpu.memory_space<vmem>>, vector<32x1xf32>
    tpu.vector_store %arg29[%c0_90, %c0_91], %151 {strides = array<i32>} : memref<32x1xf32, #tpu.memory_space<vmem>>, vector<32x1xf32>,
    return
  }
}

</mosaic_0001>

<bundles_post_ra>
// kernel: net_new_new_forward.1
= control target key start
LH: loop header
LB: loop body
LE: loop exit
PB: predicated region body
PF: predicated region fallthrough
CT: control target
= control target key end

     0   :  { %s2742_s3 = smov 5   ;;  %s2743_s10 = smov 9   ;;  %vm143_vm0 = vcmask 1045504   ;;  %vm136_vm1 = vcmask 48128   ;;  %vm333_vm2 = vcmask 1041408   ;;  %vm326_vm3 = vcmask 80896   ;;  %s3250_s0 = inlined_call_operand.smem [shape: u32[30], index: -1, kind: input, shape index: {}] }
   0x1   :  { %s2214_s6 = sld [smem:[%s3250_s0 + %s2742_s3]]   ;;  %s2744_s14 = smov 1   ;;  %vm233_vm4 = vcmask 130048   ;;  %v2749_v25 = vmov 0   ;;  %v524_v39 = vlaneseq  ;;  %v2754_v45 = vmov 0.0  }
   0x2   :  { %s1_s9 = sld [smem:[%s3250_s0]]   ;;  %s2745_s18 = smov 7   ;;  %2724 = vset.pattern.permute.xlu1 %v2749_v25  ;;  %2725 = vset.pattern.permute.xlu0 %v2749_v25  ;;  %vm995_vm13 = vcmask 392192   ;;  %vm1000_vm14 = vcmask 654336   ;;  %vm1030_vm15 = vcmask 916480  }
   0x3   :  { %s2218_s13 = sld [smem:[%s3250_s0 + %s2743_s10]]   ;;  %s2746_s22 = smov 11   ;;  %v2835_v41 = vand.u32 127, %v524_v39 }
   0x4   :  { %s2210_s17 = sld [smem:[%s3250_s0 + %s2744_s14]]   ;;  %s2747_s26 = smov 6  }
   0x5   :  { %s2216_s21 = sld [smem:[%s3250_s0 + %s2745_s18]]   ;;  %s2748_s30 = smov 10  }
   0x6   :  { %s2220_s25 = sld [smem:[%s3250_s0 + %s2746_s22]]   ;;  %s2750_s4 = smov 2  }
   0x7   :  { %v128_v0 = vld [vmem:[%s2214_s6] sm:$0x3f]  ;;  %s2215_s29 = sld [smem:[%s3250_s0 + %s2747_s26]]   ;;  %s2751_s8 = smov 3  }
   0x8   :  { %2450 = vmatprep.subr.msk.mxu0 %vm143_vm0, %v128_v0  ;;  %v2793_v1 = vld [vmem:[%s1_s9] sm:$0xff]  ;;  %v2795_v2 = vld [vmem:[%s1_s9 + $0x8] sm:$0xff]  ;;  %s2219_s3 = sld [smem:[%s3250_s0 + %s2748_s30]]   ;;  %s2752_s12 = smov 12  }
   0x9   :  { %2451 = vmatpush3.msk.msra.mxu0 %vm143_vm0, %v128_v0  ;;  %2452 = vmatprep.mubr.msk.f32.mxu0 %vm136_vm1, %v2793_v1  ;;  %v318_v3 = vld [vmem:[%s2218_s13 + $0x8] sm:$0x3]  ;;  %v317_v4 = vld [vmem:[%s2218_s13] sm:$0xff]  ;;  %s2821_s7 = sld [smem:[%s3250_s0 + %s2750_s4]]   ;;  %s2753_s16 = smov 16   ;;  %vm866_vm0 = vcmask 261120  }
   0xa   :  { %2453 = vmatmul.mubr.msk.f32.vlgmr.msra.gmra.mxu0 %vm136_vm1, %v2795_v2  ;;  %2462 = vmatprep.subr.msk.mxu0 %vm333_vm2, %v318_v3  ;;  %v126_v5 = vld [vmem:[%s2210_s17] sm:$0xff]  ;;  %v127_v6 = vld [vmem:[%s2210_s17 + $0x8] sm:$0xff]  ;;  %s2212_s11 = sld [smem:[%s3250_s0 + %s2751_s8]]   ;;  %s2755_s17 = smov 8  }
   0xb   :  { %2463 = vmatpush3.msk.msra.mxu0 %vm333_vm2, %v318_v3  ;;  %2466 = vmatprep.mubr.msk.f32.mxu0 %vm326_vm3, %v126_v5  ;;  %v225_v7 = vld [vmem:[%s2216_s21 + $0x8] sm:$0xff]  ;;  %v224_v8 = vld [vmem:[%s2216_s21] sm:$0xff]  ;;  %s2221_s15 = sld [smem:[%s3250_s0 + %s2752_s12]]   ;;  %s2756_s21 = smov 13   ;;  %vm1346_vm2 = vcmask 785408  }
   0xc   :  { %2464 = vmatprep.subr.mxu0 %v317_v4  ;;  %2455 = vmatprep.subr.mxu1 %v225_v7  ;;  %v415_v9 = vld [vmem:[%s2220_s25 + $0x8] sm:$0xff]  ;;  %v414_v22 = vld [vmem:[%s2220_s25] sm:$0xff]  ;;  %s2217_s20 = sld [smem:[%s3250_s0 + %s2755_s17]]   ;;  %s2757_s25 = smov 32  }
   0xd   :  { %2465 = vmatpush3.msra.mxu0 %v317_v4  ;;  %2456 = vmatpush3.msra.mxu1 %v225_v7  ;;  %v2239_v10 = vld [vmem:[%s2215_s29] ss:$0 sm:$0xff]  ;;  %s2910_s24 = sld [smem:[%s3250_s0 + %s2756_s21]]   ;;  %s2759_s27 = smov 112  }
   0xe   :  { %2467 = vmatmul.mubr.msk.f32.vlgmr.msra.gmra.mxu0 %vm326_vm3, %v127_v6  ;;  %2457 = vmatprep.subr.mxu1 %v224_v8  ;;  %v2246_v15 = vld [vmem:[%s2219_s3] ss:$0 sm:$0xff]  ;;  %s2760_s28 = smov 17   ;;  %s2761_s2 = smov 14  }
   0xf   :  { %2458 = vmatpush3.msra.mxu1 %v224_v8  ;;  %v526_v26 = vld [vmem:[%s2821_s7] sm:$0xff]  ;;  %v527_v42 = vld [vmem:[%s2821_s7 + $0x8] sm:$0xff]  ;;  %v528_v44 = vld [vmem:[%s2821_s7 + $0x10] sm:$0xff]  ;;  %s2226_s1 = sld [smem:[%s3250_s0 + %s2760_s28]]   ;;  %s2762_s6 = smov 15  }
  0x10   :  { %2469 = vmatprep.subr.mxu1 %v415_v9  ;;  %531 = vperm.xlu1 %2724, %v526_v26   ;;  %v554_v27 = vld [vmem:[%s2212_s11] sm:$0xff]  ;;  %v555_v28 = vld [vmem:[%s2212_s11 + $0x8] sm:$0xff]  ;;  %v556_v29 = vld [vmem:[%s2212_s11 + $0x10] sm:$0xff]  ;;  %s2223_s5 = sld [smem:[%s3250_s0 + %s2761_s2]]   ;;  %s2763_s13 = smov 19  }
  0x11   :  { %v557_v30 = vld [vmem:[%s2212_s11 + $0x18] sm:$0xff]  ;;  %v2250_v33 = vld [vmem:[%s2221_s15] ss:$0 sm:$0xff]  ;;  %s2224_s9 = sld [smem:[%s3250_s0 + %s2762_s6]]   ;;  %s2764_s17 = smov 18  }
  0x12   :  { %v529_v48 = vld [vmem:[%s2821_s7 + $0x18] sm:$0xff]  ;;  %v2243_v50 = vld [vmem:[%s2217_s20] ss:$0 sm:$0xff]  ;;  %s2225_s12 = sld [smem:[%s3250_s0 + %s2753_s16]]   ;;  %s2765_s21 = smov 4  }
  0x13   :  { %v1008_v25 = vld [vmem:[%s2910_s24 + $0x18] sm:$0xff]  ;;  %v1007_v26 = vld [vmem:[%s2910_s24 + $0x10] sm:$0xff]  ;;  %s2227_s20 = sld [smem:[%s3250_s0 + %s2764_s17]]   ;;  %s2771_s15 = smov 24  }
  0x14   :  { %559 = vperm.xlu1 %2724, %v554_v27   ;;  %v1006_v27 = vld [vmem:[%s2910_s24 + $0x8] sm:$0xff]  ;;  %s2233_s18 = sld [smem:[%s3250_s0 + %s2771_s15]]   ;;  %s2772_s19 = smov 27  }
  0x15   :  { %s2236_s22 = sld [smem:[%s3250_s0 + %s2772_s19]]   ;;  %s2773_s23 = smov 28  }
  0x16   :  { %s2237_s28 = sld [smem:[%s3250_s0 + %s2773_s23]]   ;;  %s2774_s29 = smov 26  }
  0x17   :  { %s2235_s2 = sld [smem:[%s3250_s0 + %s2774_s29]]   ;;  %s2775_s3 = smov 29  }
  0x18   :  { %562 = vperm.xlu1 %2724, %v555_v28   ;;  %v1005_v28 = vld [vmem:[%s2910_s24] sm:$0xff]  ;;  %s2238_s6 = sld [smem:[%s3250_s0 + %s2775_s3]]  }
  0x1c   :  { %518 = vrot.lane.b32.xlu1 %v127_v6, %s2747_s26 }
  0x20   :  { %516 = vrot.lane.b32.xlu1 %v126_v5, %s2747_s26  ;;  %s2758_s26 = smov 64  }
  0x24   :  { %565 = vperm.xlu1 %2724, %v556_v29  }
  0x28   :  { %568 = vperm.xlu1 %2724, %v557_v30  }
  0x8b   :  { %v532_v43 = vpop.permute.xlu1 %531 }
  0x8c   :  { %vm542_vm5 = vcmp.eq.s32.totalorder %v2835_v41, %v532_v43 }
  0x8d   :  { %v2841_v46 = vsel %vm542_vm5, 1.0, %v2754_v45 }
  0x8e   :  { %2480 = vmatprep.mubr.msk.f32.mxu0 %vm233_vm4, %v2841_v46 }
  0x8f   :  { %v560_v47 = vpop.permute.xlu1 %559 }
  0x90   :  { %vm570_vm6 = vcmp.eq.s32.totalorder %v2835_v41, %v560_v47 }
  0x91   :  { %v2848_v49 = vsel %vm570_vm6, 1.0, %v2754_v45 }
  0x93   :  { %v563_v59 = vpop.permute.xlu1 %562 }
  0x94   :  { %vm571_vm7 = vcmp.eq.s32.totalorder %v2835_v41, %v563_v59 }
  0x97   :  { %v519_v61 = vpop.permute.xlu1 %518 }
  0x98   :  { %v523_v4 = vsel %vm136_vm1, %v2795_v2, %v519_v61 }
  0x9b   :  { %v517_v63 = vpop.permute.xlu1 %516 }
  0x9c   :  { %v522_v7 = vsel %vm136_vm1, %v2793_v1, %v517_v63  ;;  %vm1173_vm1 = vcmask 523264  }
  0x9f   :  { %v566_v3 = vpop.permute.xlu1 %565 }
  0xa0   :  { %vm572_vm9 = vcmp.eq.s32.totalorder %v2835_v41, %v566_v3 }
  0xa1   :  { %v2882_v1 = vsel %vm572_vm9, 1.0, %v2754_v45 }
  0xa3   :  { %v569_v2 = vpop.permute.xlu1 %568 }
  0xa4   :  { %vm573_vm11 = vcmp.eq.s32.totalorder %v2835_v41, %v569_v2 }
  0xca   :  { %v2454_v11 = vpop.f32.mrf.mxu0 }
  0xcb   :  { %v219_v12 = vadd.f32 %v2454_v11, %v2239_v10 }
  0xcc   :  { %v213_v13 = vpop.f32.mrf.mxu0 }
  0xcd   :  { %v214_v14 = vadd.f32 %v2239_v10, %v213_v13  ;;  %v223_v18 = vmax.f32 %v219_v12, 0.0  ;;  %v2876_v10 = vsel %vm571_vm7, 1.0, %v2754_v45  ;;  %v2898_v13 = vsel %vm573_vm11, 1.0, %v2754_v45 }
  0xce   :  { %v2468_v16 = vpop.f32.mrf.mxu0 }
  0xcf   :  { %v222_v17 = vmax.f32 %v214_v14, 0.0  ;;  %v409_v19 = vadd.f32 %v2468_v16, %v2246_v15  ;;  %v1017_v16 = vld [vmem:[%s2910_s24 + $0x60] sm:$0xff] }
  0xd0   :  { %v403_v20 = vpop.f32.mrf.mxu0 }
  0xd1   :  { %v404_v21 = vadd.f32 %v2246_v15, %v403_v20  ;;  %2459 = vmatprep.mubr.msk.f32.mxu1 %vm233_vm4, %v222_v17  ;;  %v413_v24 = vmax.f32 %v409_v19, 0.0  ;;  %v1018_v15 = vld [vmem:[%s2910_s24 + $0x68] sm:$0xff]  ;;  %v1016_v17 = vld [vmem:[%s2910_s24 + $0x58] sm:$0xff]  ;;  %v1013_v20 = vld [vmem:[%s2910_s24 + $0x40] sm:$0xff] }
  0xd2   :  { %2460 = vmatmul.mubr.msk.f32.vlgmr.msra.gmra.mxu1 %vm233_vm4, %v223_v18  ;;  %v1015_v18 = vld [vmem:[%s2910_s24 + $0x50] sm:$0xff]  ;;  %v1014_v19 = vld [vmem:[%s2910_s24 + $0x48] sm:$0xff] }
  0xd3   :  { %v412_v23 = vmax.f32 %v404_v21, 0.0  ;;  %2470 = vmatpush3.msra.mxu1 %v415_v9  ;;  %v1012_v21 = vld [vmem:[%s2910_s24 + $0x38] sm:$0xff] }
  0xd4   :  { %2471 = vmatprep.subr.mxu1 %v414_v22 }
  0xd5   :  { %2472 = vmatpush3.msra.mxu1 %v414_v22  ;;  %2473 = vmatprep.mubr.msk.f32.mxu1 %vm233_vm4, %v412_v23  ;;  %v1011_v22 = vld [vmem:[%s2910_s24 + $0x30] sm:$0xff]  ;;  %v1010_v23 = vld [vmem:[%s2910_s24 + $0x28] sm:$0xff] }
  0xd6   :  { %2474 = vmatmul.mubr.msk.f32.vlgmr.msra.gmra.mxu1 %vm233_vm4, %v413_v24  ;;  %v1009_v24 = vld [vmem:[%s2910_s24 + $0x20] sm:$0xff]  ;;  %s2213_s24 = sld [smem:[%s3250_s0 + %s2765_s21]]  }
  0xd7   :  { %2490 = vmatprep.mubr.msk.f32.mxu1 %vm233_vm4, %v2848_v49 }
 0x192   :  { %v2461_v31 = vpop.f32.mrf.mxu1 }
 0x193   :  { %v312_v51 = vadd.f32 %v2461_v31, %v2243_v50 }
 0x194   :  { %v306_v32 = vpop.f32.mrf.mxu1 }
 0x195   :  { %v316_v52 = vmax.f32 %v312_v51, 0.0  ;;  %v307_v53 = vadd.f32 %v2243_v50, %v306_v32 }
 0x196   :  { %v2475_v34 = vpop.f32.mrf.mxu1 }
 0x197   :  { %v501_v35 = vadd.f32 %v2475_v34, %v2250_v33  ;;  %v315_v56 = vmax.f32 %v307_v53, 0.0 }
 0x198   :  { %v495_v36 = vpop.f32.mrf.mxu1 }
 0x199   :  { %v505_v37 = vmax.f32 %v501_v35, 0.0  ;;  %v496_v38 = vadd.f32 %v2250_v33, %v495_v36 }
 0x19b   :  { %510 = vrot.lane.b32.xlu0 %v505_v37, %s2753_s16  ;;  %v504_v40 = vmax.f32 %v496_v38, 0.0 }
 0x19f   :  { %508 = vrot.lane.b32.xlu0 %v504_v40, %s2753_s16 }
 0x1a3   :  { %534 = vperm.xlu0 %2725, %v527_v42  }
 0x1a7   :  { %537 = vperm.xlu0 %2725, %v528_v44  }
 0x1ab   :  { %540 = vperm.xlu0 %2725, %v529_v48  }
 0x20d   :  { %v511_v54 = vpop.permute.xlu0 %510 }
 0x20e   :  { %v2856_v55 = vsel %vm233_vm4, %v316_v52, %v511_v54 }
 0x20f   :  { %586 = vrot.lane.b32.xlu0 %v2856_v55, %s2753_s16 }
 0x211   :  { %v509_v57 = vpop.permute.xlu0 %508 }
 0x212   :  { %v2861_v58 = vsel %vm233_vm4, %v315_v56, %v509_v57 }
 0x213   :  { %584 = vrot.lane.b32.xlu0 %v2861_v58, %s2753_s16 }
 0x21e   :  { %v535_v60 = vpop.permute.xlu0 %534 }
 0x21f   :  { %vm543_vm8 = vcmp.eq.s32.totalorder %v2835_v41, %v535_v60 }
 0x220   :  { %v2879_v11 = vsel %vm543_vm8, 1.0, %v2754_v45 }
 0x222   :  { %v538_v62 = vpop.permute.xlu0 %537 }
 0x223   :  { %vm544_vm10 = vcmp.eq.s32.totalorder %v2835_v41, %v538_v62 }
 0x224   :  { %v2885_v12 = vsel %vm544_vm10, 1.0, %v2754_v45 }
 0x226   :  { %v541_v0 = vpop.permute.xlu0 %540 }
 0x227   :  { %vm545_vm12 = vcmp.eq.s32.totalorder %v2835_v41, %v541_v0 }
 0x228   :  { %v2901_v14 = vsel %vm545_vm12, 1.0, %v2754_v45 }
 0x281   :  { %v587_v5 = vpop.permute.xlu0 %586 }
 0x282   :  { %v591_v6 = vsel %vm233_vm4, %v523_v4, %v587_v5 }
 0x283   :  { %2476 = vmatprep.subr.mxu0 %v591_v6  ;;  %2486 = vmatprep.subr.mxu1 %v591_v6 }
 0x284   :  { %2477 = vmatpush3.msra.mxu0 %v591_v6  ;;  %2487 = vmatpush3.msra.mxu1 %v591_v6 }
 0x285   :  { %v585_v8 = vpop.permute.xlu0 %584 }
 0x286   :  { %v590_v9 = vsel %vm233_vm4, %v522_v7, %v585_v8 }
 0x287   :  { %2478 = vmatprep.subr.mxu0 %v590_v9  ;;  %2488 = vmatprep.subr.mxu1 %v590_v9 }
 0x288   :  { %2479 = vmatpush3.msra.mxu0 %v590_v9  ;;  %2489 = vmatpush3.msra.mxu1 %v590_v9 }
 0x289   :  { %2481 = vmatmul.mubr.msk.f32.vlgmr.msra.gmra.mxu0 %vm233_vm4, %v2879_v11  ;;  %2491 = vmatmul.mubr.msk.f32.vlgmr.msra.gmra.mxu1 %vm233_vm4, %v2876_v10 }
 0x28a   :  { %2483 = vmatprep.mubr.msk.f32.mxu0 %vm233_vm4, %v2885_v12  ;;  %2493 = vmatprep.mubr.msk.f32.mxu1 %vm233_vm4, %v2882_v1 }
 0x28b   :  { %2496 = vmatprep.subr.mxu0 %v1018_v15 }
 0x28c   :  { %2497 = vmatpush3.msra.mxu0 %v1018_v15 }
 0x28d   :  { %2484 = vmatmul.mubr.msk.f32.gmra.mxu0 %vm233_vm4, %v2901_v14  ;;  %2494 = vmatmul.mubr.msk.f32.gmra.mxu1 %vm233_vm4, %v2898_v13 }
 0x28e   :  { %2498 = vmatprep.subr.mxu0 %v1017_v16 }
 0x28f   :  { %2499 = vmatpush3.msra.mxu0 %v1017_v16 }
 0x290   :  { %2500 = vmatprep.subr.mxu0 %v1016_v17 }
 0x291   :  { %2501 = vmatpush3.msra.mxu0 %v1016_v17 }
 0x292   :  { %2502 = vmatprep.subr.mxu0 %v1015_v18 }
 0x293   :  { %2503 = vmatpush3.msra.mxu0 %v1015_v18 }
 0x294   :  { %2504 = vmatprep.subr.mxu0 %v1014_v19 }
 0x295   :  { %2505 = vmatpush3.msra.mxu0 %v1014_v19 }
 0x296   :  { %2506 = vmatprep.subr.mxu0 %v1013_v20 }
 0x297   :  { %2507 = vmatpush3.msra.mxu0 %v1013_v20 }
 0x298   :  { %2508 = vmatprep.subr.mxu0 %v1012_v21 }
 0x299   :  { %2509 = vmatpush3.msra.mxu0 %v1012_v21 }
 0x29a   :  { %2510 = vmatprep.subr.mxu0 %v1011_v22 }
 0x29b   :  { %2511 = vmatpush3.msra.mxu0 %v1011_v22 }
 0x29c   :  { %2512 = vmatprep.subr.mxu0 %v1010_v23 }
 0x29d   :  { %2513 = vmatpush3.msra.mxu0 %v1010_v23 }
 0x29e   :  { %2514 = vmatprep.subr.mxu0 %v1009_v24 }
 0x29f   :  { %2515 = vmatpush3.msra.mxu0 %v1009_v24 }
 0x2a0   :  { %2516 = vmatprep.subr.mxu0 %v1008_v25 }
 0x2a1   :  { %2517 = vmatpush3.msra.mxu0 %v1008_v25 }
 0x2a2   :  { %2518 = vmatprep.subr.mxu0 %v1007_v26 }
 0x2a3   :  { %2519 = vmatpush3.msra.mxu0 %v1007_v26 }
 0x2a4   :  { %2520 = vmatprep.subr.mxu0 %v1006_v27 }
 0x2a5   :  { %2521 = vmatpush3.msra.mxu0 %v1006_v27 }
 0x2a6   :  { %2522 = vmatprep.subr.mxu0 %v1005_v28 }
 0x2a7   :  { %2523 = vmatpush3.msra.mxu0 %v1005_v28 }
 0x349   :  { %v2926_v29 = vpop.f32.mrf.mxu0  ;;  %v2928_v30 = vpop.f32.mrf.mxu1 }
 0x34a   :  { %965 = vrot.lane.b32.xlu0 %v2928_v30, %s2757_s25  ;;  %v952_v31 = vsub.f32 %v2926_v29, %v2928_v30  ;;  %v819_v51 = vmul.f32 %v2928_v30, %v2928_v30  ;;  %v803_v52 = vmul.f32 %v2926_v29, %v2926_v29  ;;  %v2994_v59 = vmul.f32 %v2928_v30, %v2926_v29 }
 0x34b   :  { %v2934_v32 = vpop.f32.mrf.mxu0  ;;  %v2936_v33 = vpop.f32.mrf.mxu1 }
 0x34c   :  { %963 = vrot.lane.b32.xlu1 %v2936_v33, %s2757_s25  ;;  %v2940_v34 = vand.u32 2147483647, %v952_v31  ;;  %v951_v35 = vsub.f32 %v2934_v32, %v2936_v33  ;;  %v818_v48 = vmul.f32 %v2936_v33, %v2936_v33  ;;  %v802_v50 = vmul.f32 %v2934_v32, %v2934_v32 }
 0x34d   :  { %v2944_v36 = vpop.f32.mrf.mxu0  ;;  %v2946_v37 = vpop.f32.mrf.mxu1  ;;  %v3000_v60 = vmul.f32 %v2936_v33, %v2934_v32  ;;  %v809_v0 = vsel %vm233_vm4, %v803_v52, 0.0  ;;  %v825_v5 = vsel %vm233_vm4, %v819_v51, 0.0 }
 0x34e   :  { %981 = vrot.lane.b32.xlu0 %v2940_v34, %s2758_s26  ;;  %v955_v38 = vand.u32 2147483647, %v951_v35  ;;  %v954_v42 = vsub.f32 %v2944_v36, %v2946_v37  ;;  %v821_v56 = vmul.f32 %v2946_v37, %v2946_v37  ;;  %v805_v57 = vmul.f32 %v2944_v36, %v2944_v36 }
 0x34f   :  { %v2950_v40 = vpop.f32.mrf.mxu0  ;;  %v2952_v41 = vpop.f32.mrf.mxu1  ;;  %v3006_v61 = vmul.f32 %v2946_v37, %v2944_v36  ;;  %v822_v63 = vsel %vm233_vm4, %v818_v48, 0.0  ;;  %v806_v3 = vsel %vm233_vm4, %v802_v50, 0.0  ;;  %v992_v17 = vsel %vm233_vm4, %v2940_v34, %v2926_v29 }
 0x350   :  { %979 = vrot.lane.b32.xlu1 %v955_v38, %s2758_s26  ;;  %v953_v43 = vsub.f32 %v2950_v40, %v2952_v41  ;;  %v2963_v44 = vand.u32 2147483647, %v954_v42  ;;  %v820_v53 = vmul.f32 %v2952_v41, %v2952_v41  ;;  %v804_v54 = vmul.f32 %v2950_v40, %v2950_v40 }
 0x351   :  { %v3012_v62 = vmul.f32 %v2952_v41, %v2950_v40  ;;  %v815_v6 = vsel %vm233_vm4, %v805_v57, 0.0  ;;  %v831_v8 = vsel %vm233_vm4, %v821_v56, 0.0  ;;  %v991_v16 = vsel %vm233_vm4, %v955_v38, %v2934_v32 }
 0x352   :  { %969 = vrot.lane.b32.xlu0 %v2946_v37, %s2757_s25  ;;  %v957_v47 = vand.u32 2147483647, %v953_v43  ;;  %v812_v4 = vsel %vm233_vm4, %v804_v54, 0.0  ;;  %v828_v7 = vsel %vm233_vm4, %v820_v53, 0.0  ;;  %v994_v27 = vsel %vm233_vm4, %v2963_v44, %v2944_v36 }
 0x354   :  { %967 = vrot.lane.b32.xlu1 %v2952_v41, %s2757_s25  ;;  %v993_v26 = vsel %vm233_vm4, %v957_v47, %v2950_v40 }
 0x356   :  { %985 = vrot.lane.b32.xlu0 %v2963_v44, %s2758_s26 }
 0x358   :  { %983 = vrot.lane.b32.xlu1 %v957_v47, %s2758_s26 }
 0x35a   :  { %911 = vrot.lane.b32.xlu0 %v818_v48, %s2759_s27 }
 0x35c   :  { %883 = vrot.lane.b32.xlu1 %v802_v50, %s2759_s27 }
 0x35e   :  { %913 = vrot.lane.b32.xlu0 %v819_v51, %s2759_s27 }
 0x360   :  { %885 = vrot.lane.b32.xlu1 %v803_v52, %s2759_s27 }
 0x362   :  { %915 = vrot.lane.b32.xlu0 %v820_v53, %s2759_s27 }
 0x364   :  { %887 = vrot.lane.b32.xlu1 %v804_v54, %s2759_s27 }
 0x366   :  { %917 = vrot.lane.b32.xlu0 %v821_v56, %s2759_s27 }
 0x368   :  { %889 = vrot.lane.b32.xlu1 %v805_v57, %s2759_s27 }
 0x36a   :  { %856 = vrot.lane.b32.xlu0 %v2994_v59, %s2759_s27 }
 0x36c   :  { %854 = vrot.lane.b32.xlu1 %v3000_v60, %s2759_s27 }
 0x36e   :  { %860 = vrot.lane.b32.xlu0 %v3006_v61, %s2759_s27 }
 0x370   :  { %858 = vrot.lane.b32.xlu1 %v3012_v62, %s2759_s27 }
 0x38d   :  { %823 = vadd.xlane.f32.xlu0 %v822_v63 }
 0x391   :  { %810 = vadd.xlane.f32.xlu0 %v809_v0 }
 0x394   :  { %807 = vadd.xlane.f32.xlu1 %v806_v3 }
 0x395   :  { %813 = vadd.xlane.f32.xlu0 %v812_v4 }
 0x398   :  { %826 = vadd.xlane.f32.xlu1 %v825_v5  ;;  %v793_v5 = vsel %vm233_vm4, %v2994_v59, 0.0  ;;  %v796_v59 = vsel %vm233_vm4, %v3012_v62, 0.0  ;;  %v1164_v62 = vld [vmem:[%s2226_s1 + $0x30] sm:$0xff] }
 0x399   :  { %816 = vadd.xlane.f32.xlu0 %v815_v6 }
 0x39c   :  { %829 = vadd.xlane.f32.xlu1 %v828_v7  ;;  %v790_v7 = vsel %vm233_vm4, %v3000_v60, 0.0 }
 0x3a0   :  { %832 = vadd.xlane.f32.xlu1 %v831_v8 }
 0x3bc   :  { %v966_v2 = vpop.permute.xlu0 %965 }
 0x3bd   :  { %v997_v20 = vsel %vm995_vm13, %v992_v17, %v966_v2 }
 0x3be   :  { %v964_v9 = vpop.permute.xlu1 %963 }
 0x3bf   :  { %v996_v18 = vsel %vm995_vm13, %v991_v16, %v964_v9 }
 0x3c0   :  { %v982_v15 = vpop.permute.xlu0 %981 }
 0x3c1   :  { %v1002_v22 = vsel %vm1000_vm14, %v997_v20, %v982_v15  ;;  %v799_v15 = vsel %vm233_vm4, %v3006_v61, 0.0  ;;  %v1165_v61 = vld [vmem:[%s2226_s1 + $0x38] sm:$0xff] }
 0x3c2   :  { %v980_v19 = vpop.permute.xlu1 %979  ;;  %2530 = vmatprep.subr.mxu1 %v1165_v61 }
 0x3c3   :  { %v1001_v21 = vsel %vm1000_vm14, %v996_v18, %v980_v19  ;;  %2531 = vmatpush3.msra.mxu1 %v1165_v61  ;;  %v2274_v61 = vld [vmem:[%s2224_s9] ss:$0 sm:$0xff]  ;;  %s2769_s9 = smov 23  }
 0x3c4   :  { %v970_v23 = vpop.permute.xlu0 %969  ;;  %2524 = vmatprep.mubr.msk.f32.mxu0 %vm1030_vm15, %v1001_v21  ;;  %2532 = vmatprep.subr.mxu1 %v1164_v62 }
 0x3c5   :  { %2525 = vmatmul.mubr.msk.f32.vlgmr.msra.gmra.mxu0 %vm1030_vm15, %v1002_v22  ;;  %v999_v34 = vsel %vm995_vm13, %v994_v27, %v970_v23  ;;  %2533 = vmatpush3.msra.mxu1 %v1164_v62 }
 0x3c6   :  { %v968_v24 = vpop.permute.xlu1 %967 }
 0x3c7   :  { %v998_v28 = vsel %vm995_vm13, %v993_v26, %v968_v24 }
 0x3c8   :  { %v986_v25 = vpop.permute.xlu0 %985 }
 0x3c9   :  { %v1004_v38 = vsel %vm1000_vm14, %v999_v34, %v986_v25 }
 0x3ca   :  { %v984_v31 = vpop.permute.xlu1 %983 }
 0x3cb   :  { %v1003_v35 = vsel %vm1000_vm14, %v998_v28, %v984_v31 }
 0x3cc   :  { %v912_v42 = vpop.permute.xlu0 %911  ;;  %2527 = vmatprep.mubr.msk.f32.mxu0 %vm1030_vm15, %v1003_v35 }
 0x3cd   :  { %2528 = vmatmul.mubr.msk.f32.gmra.mxu0 %vm1030_vm15, %v1004_v38  ;;  %v923_v52 = vsel %vm866_vm0, %v912_v42, 0.0 }
 0x3ce   :  { %v884_v43 = vpop.permute.xlu1 %883 }
 0x3cf   :  { %v895_v54 = vsel %vm866_vm0, %v884_v43, 0.0 }
 0x3d0   :  { %v914_v47 = vpop.permute.xlu0 %913 }
 0x3d1   :  { %v926_v48 = vsel %vm866_vm0, %v914_v47, 0.0 }
 0x3d2   :  { %v886_v44 = vpop.permute.xlu1 %885  ;;  %927 = vadd.xlane.f32.xlu1 %v926_v48 }
 0x3d3   :  { %v898_v50 = vsel %vm866_vm0, %v886_v44, 0.0 }
 0x3d4   :  { %v916_v51 = vpop.permute.xlu0 %915  ;;  %899 = vadd.xlane.f32.xlu0 %v898_v50 }
 0x3d5   :  { %v929_v56 = vsel %vm866_vm0, %v916_v51, 0.0 }
 0x3d6   :  { %v888_v53 = vpop.permute.xlu1 %887  ;;  %924 = vadd.xlane.f32.xlu1 %v923_v52 }
 0x3d7   :  { %v901_v63 = vsel %vm866_vm0, %v888_v53, 0.0 }
 0x3d8   :  { %896 = vadd.xlane.f32.xlu0 %v895_v54  ;;  %v918_v57 = vpop.permute.xlu0 %917 }
 0x3d9   :  { %v932_v3 = vsel %vm866_vm0, %v918_v57, 0.0 }
 0x3da   :  { %930 = vadd.xlane.f32.xlu1 %v929_v56  ;;  %v890_v0 = vpop.permute.xlu1 %889 }
 0x3db   :  { %v904_v4 = vsel %vm866_vm0, %v890_v0, 0.0 }
 0x3dc   :  { %902 = vadd.xlane.f32.xlu0 %v901_v63  ;;  %v857_v6 = vpop.permute.xlu0 %856 }
 0x3dd   :  { %v870_v2 = vsel %vm866_vm0, %v857_v6, 0.0 }
 0x3de   :  { %933 = vadd.xlane.f32.xlu1 %v932_v3  ;;  %v855_v8 = vpop.permute.xlu1 %854 }
 0x3df   :  { %v867_v9 = vsel %vm866_vm0, %v855_v8, 0.0 }
 0x3e0   :  { %905 = vadd.xlane.f32.xlu0 %v904_v4  ;;  %v861_v16 = vpop.permute.xlu0 %860 }
 0x3e1   :  { %v876_v60 = vsel %vm866_vm0, %v861_v16, 0.0 }
 0x3e2   :  { %794 = vadd.xlane.f32.xlu1 %v793_v5  ;;  %v859_v17 = vpop.permute.xlu1 %858 }
 0x3e3   :  { %v873_v18 = vsel %vm866_vm0, %v859_v17, 0.0  ;;  %v2269_v17 = vld [vmem:[%s2223_s5] ss:$0 sm:$0xff]  ;;  %s2768_s5 = smov 22  }
 0x3e4   :  { %791 = vadd.xlane.f32.xlu0 %v790_v7  ;;  %s2231_s8 = sld [smem:[%s3250_s0 + %s2768_s5]]  }
 0x3e6   :  { %871 = vadd.xlane.f32.xlu1 %v870_v2 }
 0x3e8   :  { %868 = vadd.xlane.f32.xlu0 %v867_v9 }
 0x3ea   :  { %800 = vadd.xlane.f32.xlu1 %v799_v15 }
 0x3ec   :  { %797 = vadd.xlane.f32.xlu0 %v796_v59 }
 0x3ee   :  { %877 = vadd.xlane.f32.xlu1 %v876_v60 }
 0x3f0   :  { %874 = vadd.xlane.f32.xlu0 %v873_v18 }
 0x3ff   :  { %1291 = vrot.lane.b32.xlu1 %v2936_v33, %s2753_s16  ;;  %v1163_v33 = vld [vmem:[%s2226_s1 + $0x28] sm:$0xff] }
 0x400   :  { %2534 = vmatprep.subr.mxu1 %v1163_v33 }
 0x401   :  { %2535 = vmatpush3.msra.mxu1 %v1163_v33 }
 0x403   :  { %1281 = vrot.lane.b32.xlu1 %v2926_v29, %s2759_s27  ;;  %v1162_v29 = vld [vmem:[%s2226_s1 + $0x20] sm:$0xff] }
 0x404   :  { %2536 = vmatprep.subr.mxu1 %v1162_v29 }
 0x405   :  { %2537 = vmatpush3.msra.mxu1 %v1162_v29 }
 0x406   :  { %1279 = vrot.lane.b32.xlu0 %v2934_v32, %s2759_s27  ;;  %v1161_v32 = vld [vmem:[%s2226_s1 + $0x18] sm:$0xff] }
 0x407   :  { %1283 = vrot.lane.b32.xlu1 %v2950_v40, %s2759_s27  ;;  %v1160_v40 = vld [vmem:[%s2226_s1 + $0x10] sm:$0xff]  ;;  %2538 = vmatprep.subr.mxu1 %v1161_v32 }
 0x408   :  { %2539 = vmatpush3.msra.mxu1 %v1161_v32 }
 0x409   :  { %2540 = vmatprep.subr.mxu1 %v1160_v40 }
 0x40a   :  { %1293 = vrot.lane.b32.xlu0 %v2928_v30, %s2753_s16  ;;  %2541 = vmatpush3.msra.mxu1 %v1160_v40  ;;  %v1159_v30 = vld [vmem:[%s2226_s1 + $0x8] sm:$0xff] }
 0x40b   :  { %1285 = vrot.lane.b32.xlu1 %v2944_v36, %s2759_s27  ;;  %2542 = vmatprep.subr.mxu1 %v1159_v30  ;;  %v1158_v36 = vld [vmem:[%s2226_s1] sm:$0xff]  ;;  %s2766_s27 = smov 20   ;;  %s2767_s1 = smov 21  }
 0x40c   :  { %2543 = vmatpush3.msra.mxu1 %v1159_v30  ;;  %s2229_s30 = sld [smem:[%s3250_s0 + %s2766_s27]]  }
 0x40d   :  { %2544 = vmatprep.subr.mxu1 %v1158_v36  ;;  %s2230_s4 = sld [smem:[%s3250_s0 + %s2767_s1]]  }
 0x40e   :  { %1295 = vrot.lane.b32.xlu0 %v2952_v41, %s2753_s16  ;;  %2545 = vmatpush3.msra.mxu1 %v1158_v36 }
 0x412   :  { %1297 = vrot.lane.b32.xlu0 %v2946_v37, %s2753_s16  ;;  %s3102_s16 = sld [smem:[%s3250_s0 + %s2763_s13]]  }
 0x416   :  { %v824_v19 = vpop.xlane.xlu0 %823 }
 0x41a   :  { %v811_v41 = vpop.xlane.xlu0 %810 }
 0x41d   :  { %v808_v20 = vpop.xlane.xlu1 %807 }
 0x41e   :  { %v814_v22 = vpop.xlane.xlu0 %813  ;;  %v834_v38 = vmul.f32 %v824_v19, %v808_v20 }
 0x420   :  { %v838_v44 = vmax.f32 %v834_v38, 1e-16 }
 0x421   :  { %v827_v21 = vpop.xlane.xlu1 %826 }
 0x422   :  { %v817_v24 = vpop.xlane.xlu0 %816  ;;  %v835_v31 = vmul.f32 %v827_v21, %v811_v41 }
 0x424   :  { %v839_v47 = vmax.f32 %v835_v31, 1e-16 }
 0x425   :  { %v830_v23 = vpop.xlane.xlu1 %829 }
 0x426   :  { %2726 = vrsqrt.f32 %v839_v47  ;;  %v836_v56 = vmul.f32 %v830_v23, %v814_v22 }
 0x428   :  { %v840_v5 = vmax.f32 %v836_v56, 1e-16 }
 0x429   :  { %v833_v25 = vpop.xlane.xlu1 %832 }
 0x42a   :  { %v837_v52 = vmul.f32 %v833_v25, %v817_v24  ;;  %v2275_v25 = vld [vmem:[%s2225_s12] ss:$0 sm:$0xff]  ;;  %s3190_s12 = sld [smem:[%s3250_s0 + %s2769_s9]]  }
 0x42c   :  { %v841_v57 = vmax.f32 %v837_v52, 1e-16 }
 0x433   :  { %v2727_v2 = vpop.eup %2726 }
 0x45b   :  { %v928_v27 = vpop.xlane.xlu1 %927 }
 0x45d   :  { %v900_v26 = vpop.xlane.xlu0 %899 }
 0x45e   :  { %v936_v35 = vmul.f32 %v928_v27, %v900_v26 }
 0x45f   :  { %v925_v37 = vpop.xlane.xlu1 %924 }
 0x460   :  { %v940_v48 = vmax.f32 %v936_v35, 1e-16 }
 0x461   :  { %v897_v28 = vpop.xlane.xlu0 %896 }
 0x462   :  { %v935_v43 = vmul.f32 %v925_v37, %v897_v28  ;;  %2728 = vrsqrt.f32 %v940_v48 }
 0x463   :  { %v931_v42 = vpop.xlane.xlu1 %930  ;;  %2730 = vrsqrt.f32 %v838_v44 }
 0x464   :  { %v939_v51 = vmax.f32 %v935_v43, 1e-16 }
 0x465   :  { %v903_v34 = vpop.xlane.xlu0 %902 }
 0x466   :  { %2732 = vrsqrt.f32 %v939_v51  ;;  %v937_v63 = vmul.f32 %v931_v42, %v903_v34 }
 0x467   :  { %v934_v53 = vpop.xlane.xlu1 %933  ;;  %2734 = vrsqrt.f32 %v841_v57 }
 0x468   :  { %v941_v6 = vmax.f32 %v937_v63, 1e-16 }
 0x469   :  { %v906_v50 = vpop.xlane.xlu0 %905 }
 0x46a   :  { %v938_v54 = vmul.f32 %v934_v53, %v906_v50 }
 0x46b   :  { %v795_v3 = vpop.xlane.xlu1 %794 }
 0x46c   :  { %v942_v0 = vmax.f32 %v938_v54, 1e-16  ;;  %v847_v16 = vmul.f32 %v2727_v2, %v795_v3  ;;  %v1337_v2 = vld [vmem:[%s3102_s16 + $0x50] sm:$0xff] }
 0x46d   :  { %v792_v4 = vpop.xlane.xlu0 %791 }
 0x46e   :  { %2736 = vrsqrt.f32 %v942_v0  ;;  %v1027_v32 = vmul.f32 %v2269_v17, %v847_v16  ;;  %v1334_v16 = vld [vmem:[%s3102_s16 + $0x38] sm:$0xff] }
 0x46f   :  { %2738 = vrsqrt.f32 %v840_v5  ;;  %v872_v7 = vpop.xlane.xlu1 %871  ;;  %v2729_v9 = vpop.eup %2728 }
 0x470   :  { %2740 = vrsqrt.f32 %v941_v6  ;;  %v2731_v15 = vpop.eup %2730  ;;  %v948_v18 = vmul.f32 %v2729_v9, %v872_v7  ;;  %v1336_v9 = vld [vmem:[%s3102_s16 + $0x48] sm:$0xff] }
 0x471   :  { %v869_v8 = vpop.xlane.xlu0 %868  ;;  %v846_v60 = vmul.f32 %v2731_v15, %v792_v4  ;;  %v1335_v15 = vld [vmem:[%s3102_s16 + $0x40] sm:$0xff] }
 0x472   :  { %v1136_v36 = vmul.f32 %v2274_v61, %v948_v18  ;;  %v1330_v18 = vld [vmem:[%s3102_s16 + $0x18] sm:$0xff] }
 0x473   :  { %v2733_v59 = vpop.eup %2732  ;;  %v801_v62 = vpop.xlane.xlu1 %800  ;;  %v1026_v20 = vmul.f32 %v2269_v17, %v846_v60  ;;  %v1331_v60 = vld [vmem:[%s3102_s16 + $0x20] sm:$0xff] }
 0x474   :  { %v947_v29 = vmul.f32 %v2733_v59, %v869_v8  ;;  %v2735_v30 = vpop.eup %2734  ;;  %v1338_v8 = vld [vmem:[%s3102_s16 + $0x58] sm:$0xff]  ;;  %v1333_v59 = vld [vmem:[%s3102_s16 + $0x30] sm:$0xff] }
 0x475   :  { %v798_v33 = vpop.xlane.xlu0 %797  ;;  %v849_v23 = vmul.f32 %v2735_v30, %v801_v62  ;;  %2552 = vmatprep.subr.mxu1 %v1338_v8  ;;  %v1328_v62 = vld [vmem:[%s3102_s16 + $0x8] sm:$0xff] }
 0x476   :  { %v1135_v22 = vmul.f32 %v2274_v61, %v947_v29  ;;  %v2276_v29 = vld [vmem:[%s2227_s20] ss:$0 sm:$0xff] }
 0x477   :  { %v878_v28 = vpop.xlane.xlu1 %877  ;;  %v1029_v48 = vmul.f32 %v2269_v17, %v849_v23 }
 0x479   :  { %v875_v37 = vpop.xlane.xlu0 %874 }
 0x47b   :  { %v2737_v41 = vpop.eup %2736 }
 0x47c   :  { %v2739_v27 = vpop.eup %2738  ;;  %v950_v34 = vmul.f32 %v2737_v41, %v878_v28 }
 0x47d   :  { %v848_v31 = vmul.f32 %v2739_v27, %v798_v33  ;;  %v2741_v38 = vpop.eup %2740  ;;  %v1327_v33 = vld [vmem:[%s3102_s16] sm:$0xff]  ;;  %v1292_v27 = vpop.permute.xlu1 %1291 }
 0x47e   :  { %v949_v43 = vmul.f32 %v2741_v38, %v875_v37  ;;  %v1138_v50 = vmul.f32 %v2274_v61, %v950_v34 }
 0x47f   :  { %v1028_v53 = vmul.f32 %v2269_v17, %v848_v31  ;;  %v1332_v17 = vld [vmem:[%s3102_s16 + $0x28] sm:$0xff] }
 0x480   :  { %v1137_v57 = vmul.f32 %v2274_v61, %v949_v43  ;;  %v1329_v61 = vld [vmem:[%s3102_s16 + $0x10] sm:$0xff] }
 0x481   :  { %v1282_v37 = vpop.permute.xlu1 %1281 }
 0x485   :  { %v2526_v40 = vpop.f32.mrf.mxu0  ;;  %v1284_v34 = vpop.permute.xlu1 %1283 }
 0x486   :  { %v1115_v19 = vadd.f32 %v2526_v40, %v1027_v32 }
 0x487   :  { %v1109_v21 = vpop.f32.mrf.mxu0 }
 0x488   :  { %v1140_v24 = vadd.f32 %v1136_v36, %v1115_v19  ;;  %v1110_v26 = vadd.f32 %v1109_v21, %v1026_v20 }
 0x489   :  { %v1286_v38 = vpop.permute.xlu1 %1285 }
 0x48a   :  { %v1139_v35 = vadd.f32 %v1135_v22, %v1110_v26  ;;  %v1151_v42 = vadd.f32 %v2275_v25, %v1140_v24  ;;  %v1280_v26 = vpop.permute.xlu0 %1279 }
 0x48b   :  { %v1319_v43 = vsel %vm866_vm0, %v1280_v26, %v1292_v27 }
 0x48c   :  { %v1150_v47 = vadd.f32 %v2275_v25, %v1139_v35  ;;  %v1155_v54 = vmax.f32 %v1151_v42, 0.0 }
 0x48d   :  { %v2529_v44 = vpop.f32.mrf.mxu0 }
 0x48e   :  { %v1154_v51 = vmax.f32 %v1150_v47, 0.0  ;;  %v1125_v52 = vadd.f32 %v2529_v44, %v1029_v48  ;;  %v1294_v28 = vpop.permute.xlu0 %1293 }
 0x48f   :  { %v1119_v56 = vpop.f32.mrf.mxu0  ;;  %v1320_v48 = vsel %vm866_vm0, %v1282_v37, %v1294_v28  ;;  %v1864_v37 = vld [vmem:[%s3190_s12 + $0x18] sm:$0xff] }
 0x490   :  { %v1142_v63 = vadd.f32 %v1138_v50, %v1125_v52  ;;  %v1120_v0 = vadd.f32 %v1119_v56, %v1028_v53  ;;  %2546 = vmatprep.mubr.msk.f32.mxu1 %vm1173_vm1, %v1154_v51 }
 0x491   :  { %2547 = vmatmul.mubr.msk.f32.vlgmr.msra.gmra.mxu1 %vm1173_vm1, %v1155_v54 }
 0x492   :  { %v1141_v3 = vadd.f32 %v1137_v57, %v1120_v0  ;;  %v1153_v4 = vadd.f32 %v2275_v25, %v1142_v63  ;;  %2553 = vmatpush3.msra.mxu1 %v1338_v8  ;;  %v1296_v31 = vpop.permute.xlu0 %1295  ;;  %v1449_v63 = vshrl.u32 %v524_v39, 7 }
 0x493   :  { %2554 = vmatprep.subr.mxu1 %v1337_v2  ;;  %v1321_v52 = vsel %vm866_vm0, %v1284_v34, %v1296_v31  ;;  %v1863_v31 = vld [vmem:[%s3190_s12 + $0x10] sm:$0xff]  ;;  %v1862_v34 = vld [vmem:[%s3190_s12 + $0x8] sm:$0xff] }
 0x494   :  { %v1152_v5 = vadd.f32 %v2275_v25, %v1141_v3  ;;  %v1157_v7 = vmax.f32 %v1153_v4, 0.0  ;;  %2555 = vmatpush3.msra.mxu1 %v1337_v2  ;;  %v1450_v0 = vadd.s32 8, %v1449_v63  ;;  %v2286_v3 = vld [vmem:[%s2213_s24] ss:$0 sm:$0xff] }
 0x495   :  { %2556 = vmatprep.subr.mxu1 %v1336_v9  ;;  %vm1456_vm3 = vcmp.eq.s32.totalorder %v1449_v63, %v2286_v3 }
 0x496   :  { %v1156_v6 = vmax.f32 %v1152_v5, 0.0  ;;  %2557 = vmatpush3.msra.mxu1 %v1336_v9  ;;  %v1298_v35 = vpop.permute.xlu0 %1297  ;;  %vm1457_vm5 = vcmp.eq.s32.totalorder %v1450_v0, %v2286_v3  ;;  %v2287_v4 = vsel %vm1456_vm3, 1.0, %v2754_v45 }
 0x497   :  { %2558 = vmatprep.subr.mxu1 %v1335_v15  ;;  %v1322_v54 = vsel %vm866_vm0, %v1286_v38, %v1298_v35  ;;  %2590 = vmatprep.mubr.msk.f32.mxu0 %vm866_vm0, %v2287_v4  ;;  %v1861_v35 = vld [vmem:[%s3190_s12] sm:$0xff] }
 0x498   :  { %2549 = vmatprep.mubr.msk.f32.mxu1 %vm1173_vm1, %v1156_v6  ;;  %2559 = vmatpush3.msra.mxu1 %v1335_v15  ;;  %v2281_v6 = vld [vmem:[%s2229_s30] ss:$0 sm:$0xff] }
 0x499   :  { %2550 = vmatmul.mubr.msk.f32.gmra.mxu1 %vm1173_vm1, %v1157_v7  ;;  %2560 = vmatprep.subr.mxu1 %v1334_v16 }
 0x49a   :  { %2561 = vmatpush3.msra.mxu1 %v1334_v16 }
 0x49b   :  { %2562 = vmatprep.subr.mxu1 %v1333_v59 }
 0x49c   :  { %2563 = vmatpush3.msra.mxu1 %v1333_v59 }
 0x49d   :  { %2564 = vmatprep.subr.mxu1 %v1332_v17 }
 0x49e   :  { %2565 = vmatpush3.msra.mxu1 %v1332_v17 }
 0x49f   :  { %2566 = vmatprep.subr.mxu1 %v1331_v60 }
 0x4a0   :  { %2567 = vmatpush3.msra.mxu1 %v1331_v60 }
 0x4a1   :  { %2568 = vmatprep.subr.mxu1 %v1330_v18 }
 0x4a2   :  { %2569 = vmatpush3.msra.mxu1 %v1330_v18  ;;  %v2288_v18 = vsel %vm1457_vm5, 1.0, %v2754_v45  ;;  %v1556_v45 = vld [vmem:[%s2230_s4 + $0x18] sm:$0xff] }
 0x4a3   :  { %2570 = vmatprep.subr.mxu1 %v1329_v61 }
 0x4a4   :  { %2571 = vmatpush3.msra.mxu1 %v1329_v61  ;;  %v1560_v61 = vld [vmem:[%s2230_s4 + $0x38] sm:$0xff] }
 0x4a5   :  { %2572 = vmatprep.subr.mxu1 %v1328_v62 }
 0x4a6   :  { %2573 = vmatpush3.msra.mxu1 %v1328_v62  ;;  %v1559_v62 = vld [vmem:[%s2230_s4 + $0x30] sm:$0xff] }
 0x4a7   :  { %2574 = vmatprep.subr.mxu1 %v1327_v33 }
 0x4a8   :  { %2575 = vmatpush3.msra.mxu1 %v1327_v33  ;;  %v1558_v33 = vld [vmem:[%s2230_s4 + $0x28] sm:$0xff] }
 0x551   :  { %v2548_v32 = vpop.f32.mrf.mxu1 }
 0x552   :  { %v1258_v40 = vadd.f32 %v2548_v32, %v2276_v29  ;;  %v1555_v32 = vld [vmem:[%s2230_s4 + $0x10] sm:$0xff] }
 0x553   :  { %v1252_v30 = vpop.f32.mrf.mxu1 }
 0x554   :  { %v1272_v36 = vmax.f32 %v1258_v40, 0.0  ;;  %v1253_v19 = vadd.f32 %v2276_v29, %v1252_v30  ;;  %v1554_v40 = vld [vmem:[%s2230_s4 + $0x8] sm:$0xff]  ;;  %v1553_v30 = vld [vmem:[%s2230_s4] sm:$0xff] }
 0x556   :  { %v1271_v20 = vmax.f32 %v1253_v19, 0.0  ;;  %1309 = vrot.lane.b32.xlu0 %v1272_v36, %s2758_s26 }
 0x558   :  { %1307 = vrot.lane.b32.xlu1 %v1271_v20, %s2758_s26 }
 0x559   :  { %v2551_v41 = vpop.f32.mrf.mxu1 }
 0x55a   :  { %v1268_v21 = vadd.f32 %v2551_v41, %v2276_v29 }
 0x55b   :  { %v1262_v22 = vpop.f32.mrf.mxu1 }
 0x55c   :  { %v1274_v23 = vmax.f32 %v1268_v21, 0.0  ;;  %v1263_v24 = vadd.f32 %v2276_v29, %v1262_v22  ;;  %v1557_v29 = vld [vmem:[%s2230_s4 + $0x20] sm:$0xff] }
 0x55e   :  { %v1273_v25 = vmax.f32 %v1263_v24, 0.0  ;;  %1313 = vrot.lane.b32.xlu0 %v1274_v23, %s2758_s26  ;;  %v2291_v23 = vld [vmem:[%s2231_s8] ss:$0 sm:$0xff] }
 0x560   :  { %1311 = vrot.lane.b32.xlu1 %v1273_v25, %s2758_s26 }
 0x5c8   :  { %v1310_v42 = vpop.permute.xlu0 %1309 }
 0x5c9   :  { %v1324_v50 = vsel %vm1173_vm1, %v1320_v48, %v1310_v42 }
 0x5ca   :  { %v1308_v47 = vpop.permute.xlu1 %1307 }
 0x5cb   :  { %v1323_v44 = vsel %vm1173_vm1, %v1319_v43, %v1308_v47 }
 0x5cc   :  { %2576 = vmatprep.mubr.msk.f32.mxu1 %vm1346_vm2, %v1323_v44 }
 0x5cd   :  { %2577 = vmatmul.mubr.msk.f32.vlgmr.msra.gmra.mxu1 %vm1346_vm2, %v1324_v50 }
 0x5d0   :  { %v1314_v51 = vpop.permute.xlu0 %1313 }
 0x5d1   :  { %v1326_v57 = vsel %vm1173_vm1, %v1322_v54, %v1314_v51 }
 0x5d2   :  { %v1312_v53 = vpop.permute.xlu1 %1311 }
 0x5d3   :  { %v1325_v56 = vsel %vm1173_vm1, %v1321_v52, %v1312_v53 }
 0x5d4   :  { %2579 = vmatprep.mubr.msk.f32.mxu1 %vm1346_vm2, %v1325_v56 }
 0x5d5   :  { %2580 = vmatmul.mubr.msk.f32.gmra.mxu1 %vm1346_vm2, %v1326_v57 }
 0x5d6   :  { %2616 = vmatprep.mubr.msk.f32.mxu1 %vm233_vm4, %v2841_v46 }
 0x68d   :  { %v2578_v46 = vpop.f32.mrf.mxu1 }
 0x68e   :  { %v1431_v39 = vadd.f32 %v2578_v46, %v2281_v6 }
 0x68f   :  { %v1425_v5 = vpop.f32.mrf.mxu1 }
 0x690   :  { %v1426_v16 = vadd.f32 %v2281_v6, %v1425_v5  ;;  %v1445_v17 = vmax.f32 %v1431_v39, 0.0 }
 0x692   :  { %v1444_v60 = vmax.f32 %v1426_v16, 0.0 }
 0x695   :  { %v2581_v7 = vpop.f32.mrf.mxu1 }
 0x696   :  { %v1441_v8 = vadd.f32 %v2581_v7, %v2281_v6 }
 0x697   :  { %v1435_v2 = vpop.f32.mrf.mxu1 }
 0x698   :  { %v3146_v9 = vmax.f32 %v1441_v8, 0.0  ;;  %v1436_v15 = vadd.f32 %v2281_v6, %v1435_v2 }
 0x69a   :  { %v3148_v59 = vmax.f32 %v1436_v15, 0.0  ;;  %2582 = vmatprep.subr.mxu0 %v3146_v9 }
 0x69b   :  { %2583 = vmatpush3.msra.mxu0 %v3146_v9 }
 0x69c   :  { %2584 = vmatprep.subr.mxu0 %v3148_v59 }
 0x69d   :  { %2585 = vmatpush3.msra.mxu0 %v3148_v59 }
 0x69e   :  { %2586 = vmatprep.subr.mxu0 %v1445_v17 }
 0x69f   :  { %2587 = vmatpush3.msra.mxu0 %v1445_v17 }
 0x6a0   :  { %2588 = vmatprep.subr.mxu0 %v1444_v60 }
 0x6a1   :  { %2589 = vmatpush3.msra.mxu0 %v1444_v60 }
 0x6a2   :  { %2591 = vmatmul.mubr.msk.f32.vlgmr.msra.gmra.mxu0 %vm866_vm0, %v2288_v18  ;;  %2593 = vmatprep.subr.mxu0 %v1560_v61 }
 0x6a3   :  { %2594 = vmatpush3.msra.mxu0 %v1560_v61 }
 0x6a4   :  { %2595 = vmatprep.subr.mxu0 %v1559_v62 }
 0x6a5   :  { %2596 = vmatpush3.msra.mxu0 %v1559_v62 }
 0x6a6   :  { %2597 = vmatprep.subr.mxu0 %v1558_v33 }
 0x6a7   :  { %2598 = vmatpush3.msra.mxu0 %v1558_v33 }
 0x6a8   :  { %2599 = vmatprep.subr.mxu0 %v1557_v29 }
 0x6a9   :  { %2600 = vmatpush3.msra.mxu0 %v1557_v29 }
 0x6aa   :  { %2601 = vmatprep.subr.mxu0 %v1556_v45 }
 0x6ab   :  { %2602 = vmatpush3.msra.mxu0 %v1556_v45 }
 0x6ac   :  { %2603 = vmatprep.subr.mxu0 %v1555_v32 }
 0x6ad   :  { %2604 = vmatpush3.msra.mxu0 %v1555_v32 }
 0x6ae   :  { %2605 = vmatprep.subr.mxu0 %v1554_v40 }
 0x6af   :  { %2606 = vmatpush3.msra.mxu0 %v1554_v40 }
 0x6b0   :  { %2607 = vmatprep.subr.mxu0 %v1553_v30 }
 0x6b1   :  { %2608 = vmatpush3.msra.mxu0 %v1553_v30 }
 0x762   :  { %v2592_v36 = vpop.f32.mrf.mxu0 }
 0x763   :  { %1547 = vrot.lane.b32.xlu0 %v2592_v36, %s2757_s25 }
 0x764   :  { %v1534_v19 = vpop.f32.mrf.mxu0 }
 0x765   :  { %1545 = vrot.lane.b32.xlu1 %v1534_v19, %s2757_s25 }
 0x767   :  { %1843 = vrot.lane.b32.xlu0 %v1445_v17, %s2758_s26  ;;  %v2302_v17 = vld [vmem:[%s2233_s18] ss:$0 sm:$0xff] }
 0x769   :  { %1841 = vrot.lane.b32.xlu1 %v1444_v60, %s2758_s26 }
 0x7d5   :  { %v1548_v20 = vpop.permute.xlu0 %1547 }
 0x7d6   :  { %v1552_v22 = vsel %vm866_vm0, %v2856_v55, %v1548_v20  ;;  %v1871_v55 = vld [vmem:[%s3190_s12 + $0x50] sm:$0xff]  ;;  %v2096_v20 = vld [vmem:[%s2236_s22 + $0x18] sm:$0xff] }
 0x7d7   :  { %v1546_v41 = vpop.permute.xlu1 %1545 }
 0x7d8   :  { %v1551_v21 = vsel %vm866_vm0, %v2861_v58, %v1546_v41  ;;  %v2095_v41 = vld [vmem:[%s2236_s22 + $0x10] sm:$0xff] }
 0x7d9   :  { %2609 = vmatprep.mubr.msk.f32.mxu0 %vm1173_vm1, %v1551_v21  ;;  %v1844_v48 = vpop.permute.xlu0 %1843  ;;  %v2094_v21 = vld [vmem:[%s2236_s22 + $0x8] sm:$0xff] }
 0x7da   :  { %2610 = vmatmul.mubr.msk.f32.vlgmr.msra.gmra.mxu0 %vm1173_vm1, %v1552_v22  ;;  %v2093_v22 = vld [vmem:[%s2236_s22] sm:$0xff] }
 0x7db   :  { %2626 = vmatprep.mubr.msk.f32.mxu0 %vm233_vm4, %v2848_v49  ;;  %v1872_v49 = vld [vmem:[%s3190_s12 + $0x58] sm:$0xff]  ;;  %v1842_v50 = vpop.permute.xlu1 %1841 }
 0x89a   :  { %v2611_v24 = vpop.f32.mrf.mxu0 }
 0x89b   :  { %v1646_v25 = vadd.f32 %v2611_v24, %v2291_v23  ;;  %v2307_v24 = vld [vmem:[%s2235_s2] ss:$0 sm:$0xff] }
 0x89c   :  { %v1640_v26 = vpop.f32.mrf.mxu0 }
 0x89d   :  { %v1650_v58 = vmax.f32 %v1646_v25, 0.0  ;;  %v1641_v27 = vadd.f32 %v2291_v23, %v1640_v26  ;;  %v64_v23 = vstv %s2237_s28 }
 0x89e   :  { %65 = vst [vmem:[#allocation2] sm:$0x1] %v64_v23 }
 0x89f   :  { %v1649_v28 = vmax.f32 %v1641_v27, 0.0  ;;  %2612 = vmatprep.subr.mxu1 %v1650_v58  ;;  %2622 = vmatprep.subr.mxu0 %v1650_v58 }
 0x8a0   :  { %2613 = vmatpush3.msra.mxu1 %v1650_v58  ;;  %2623 = vmatpush3.msra.mxu0 %v1650_v58 }
 0x8a1   :  { %2614 = vmatprep.subr.mxu1 %v1649_v28  ;;  %2624 = vmatprep.subr.mxu0 %v1649_v28 }
 0x8a2   :  { %2615 = vmatpush3.msra.mxu1 %v1649_v28  ;;  %2625 = vmatpush3.msra.mxu0 %v1649_v28 }
 0x8a3   :  { %2617 = vmatmul.mubr.msk.f32.vlgmr.msra.gmra.mxu1 %vm233_vm4, %v2879_v11  ;;  %2627 = vmatmul.mubr.msk.f32.vlgmr.msra.gmra.mxu0 %vm233_vm4, %v2876_v10  ;;  %v1870_v10 = vld [vmem:[%s3190_s12 + $0x48] sm:$0xff]  ;;  %v1869_v11 = vld [vmem:[%s3190_s12 + $0x40] sm:$0xff] }
 0x8a4   :  { %2619 = vmatprep.mubr.msk.f32.mxu1 %vm233_vm4, %v2885_v12  ;;  %2629 = vmatprep.mubr.msk.f32.mxu0 %vm233_vm4, %v2882_v1  ;;  %v1868_v1 = vld [vmem:[%s3190_s12 + $0x38] sm:$0xff]  ;;  %v1867_v12 = vld [vmem:[%s3190_s12 + $0x30] sm:$0xff] }
 0x8a5   :  { %2632 = vmatprep.subr.mxu1 %v1872_v49 }
 0x8a6   :  { %2633 = vmatpush3.msra.mxu1 %v1872_v49 }
 0x8a7   :  { %2620 = vmatmul.mubr.msk.f32.gmra.mxu1 %vm233_vm4, %v2901_v14  ;;  %2630 = vmatmul.mubr.msk.f32.gmra.mxu0 %vm233_vm4, %v2898_v13  ;;  %v1866_v13 = vld [vmem:[%s3190_s12 + $0x28] sm:$0xff]  ;;  %v1865_v14 = vld [vmem:[%s3190_s12 + $0x20] sm:$0xff]  ;;  %vm2201_vm4 = vcmask 7168  }
 0x8a8   :  { %2634 = vmatprep.subr.mxu1 %v1871_v55 }
 0x8a9   :  { %2635 = vmatpush3.msra.mxu1 %v1871_v55 }
 0x8aa   :  { %2636 = vmatprep.subr.mxu1 %v1870_v10 }
 0x8ab   :  { %2637 = vmatpush3.msra.mxu1 %v1870_v10 }
 0x8ac   :  { %2638 = vmatprep.subr.mxu1 %v1869_v11 }
 0x8ad   :  { %2639 = vmatpush3.msra.mxu1 %v1869_v11 }
 0x8ae   :  { %2640 = vmatprep.subr.mxu1 %v1868_v1 }
 0x8af   :  { %2641 = vmatpush3.msra.mxu1 %v1868_v1 }
 0x8b0   :  { %2642 = vmatprep.subr.mxu1 %v1867_v12 }
 0x8b1   :  { %2643 = vmatpush3.msra.mxu1 %v1867_v12 }
 0x8b2   :  { %2644 = vmatprep.subr.mxu1 %v1866_v13 }
 0x8b3   :  { %2645 = vmatpush3.msra.mxu1 %v1866_v13 }
 0x8b4   :  { %2646 = vmatprep.subr.mxu1 %v1865_v14 }
 0x8b5   :  { %2647 = vmatpush3.msra.mxu1 %v1865_v14  ;;  %v2312_v14 = vld [vmem:[#allocation2] ss:$0 sm:$0xff] }
 0x8b6   :  { %2648 = vmatprep.subr.mxu1 %v1864_v37 }
 0x8b7   :  { %2649 = vmatpush3.msra.mxu1 %v1864_v37 }
 0x8b8   :  { %2650 = vmatprep.subr.mxu1 %v1863_v31 }
 0x8b9   :  { %2651 = vmatpush3.msra.mxu1 %v1863_v31 }
 0x8ba   :  { %2652 = vmatprep.subr.mxu1 %v1862_v34 }
 0x8bb   :  { %2653 = vmatpush3.msra.mxu1 %v1862_v34 }
 0x8bc   :  { %2654 = vmatprep.subr.mxu1 %v1861_v35 }
 0x8bd   :  { %2655 = vmatpush3.msra.mxu1 %v1861_v35 }
 0x963   :  { %v2628_v38 = vpop.f32.mrf.mxu0  ;;  %v2618_v44 = vpop.f32.mrf.mxu1 }
 0x964   :  { %1827 = vrot.lane.b32.xlu0 %v2628_v38, %s2757_s25 }
 0x965   :  { %v1802_v42 = vpop.f32.mrf.mxu0  ;;  %v1717_v52 = vpop.f32.mrf.mxu1 }
 0x966   :  { %1825 = vrot.lane.b32.xlu1 %v1802_v42, %s2757_s25 }
 0x967   :  { %v2631_v43 = vpop.f32.mrf.mxu0  ;;  %v2621_v0 = vpop.f32.mrf.mxu1 }
 0x968   :  { %1831 = vrot.lane.b32.xlu0 %v2631_v43, %s2757_s25 }
 0x969   :  { %v1812_v47 = vpop.f32.mrf.mxu0  ;;  %v1727_v46 = vpop.f32.mrf.mxu1 }
 0x96a   :  { %1829 = vrot.lane.b32.xlu1 %v1812_v47, %s2757_s25  ;;  %s2770_s25 = smov 25  }
 0x96b   :  { %s2234_s14 = sld [smem:[%s3250_s0 + %s2770_s25]]  }
 0x96c   :  { %1847 = vrot.lane.b32.xlu0 %v3146_v9, %s2758_s26 }
 0x96e   :  { %1845 = vrot.lane.b32.xlu1 %v3148_v59, %s2758_s26 }
 0x971   :  { %v1984_v9 = vld [vmem:[%s2234_s14 + $0x18] sm:$0xff]  ;;  %v1983_v15 = vld [vmem:[%s2234_s14 + $0x10] sm:$0xff]  ;;  %v1982_v16 = vld [vmem:[%s2234_s14 + $0x8] sm:$0xff] }
 0x972   :  { %2662 = vmatprep.subr.mxu0 %v1984_v9  ;;  %v1981_v59 = vld [vmem:[%s2234_s14] sm:$0xff] }
 0x973   :  { %2663 = vmatpush3.msra.mxu0 %v1984_v9 }
 0x974   :  { %2664 = vmatprep.subr.mxu0 %v1983_v15 }
 0x975   :  { %2665 = vmatpush3.msra.mxu0 %v1983_v15 }
 0x976   :  { %2666 = vmatprep.subr.mxu0 %v1982_v16 }
 0x977   :  { %2667 = vmatpush3.msra.mxu0 %v1982_v16 }
 0x978   :  { %2668 = vmatprep.subr.mxu0 %v1981_v59 }
 0x979   :  { %2669 = vmatpush3.msra.mxu0 %v1981_v59 }
 0x97a   :  { %2676 = vmatprep.subr.mxu0 %v2096_v20 }
 0x9d6   :  { %v1828_v51 = vpop.permute.xlu0 %1827 }
 0x9d7   :  { %v1854_v53 = vsel %vm866_vm0, %v2618_v44, %v1828_v51 }
 0x9d8   :  { %v1826_v54 = vpop.permute.xlu1 %1825  ;;  %v1858_v3 = vsel %vm1173_vm1, %v1854_v53, %v1844_v48 }
 0x9d9   :  { %v1853_v56 = vsel %vm866_vm0, %v1717_v52, %v1826_v54 }
 0x9da   :  { %v1832_v57 = vpop.permute.xlu0 %1831  ;;  %v1857_v63 = vsel %vm1173_vm1, %v1853_v56, %v1842_v50 }
 0x9db   :  { %2656 = vmatprep.mubr.msk.f32.mxu1 %vm1346_vm2, %v1857_v63  ;;  %v1856_v8 = vsel %vm866_vm0, %v2621_v0, %v1832_v57 }
 0x9dc   :  { %2657 = vmatmul.mubr.msk.f32.vlgmr.msra.gmra.mxu1 %vm1346_vm2, %v1858_v3  ;;  %v1830_v4 = vpop.permute.xlu1 %1829 }
 0x9dd   :  { %v1855_v6 = vsel %vm866_vm0, %v1727_v46, %v1830_v4 }
 0x9de   :  { %v1848_v5 = vpop.permute.xlu0 %1847 }
 0x9df   :  { %v1860_v39 = vsel %vm1173_vm1, %v1856_v8, %v1848_v5 }
 0x9e0   :  { %v1846_v7 = vpop.permute.xlu1 %1845 }
 0x9e1   :  { %v1859_v2 = vsel %vm1173_vm1, %v1855_v6, %v1846_v7 }
 0x9e2   :  { %2659 = vmatprep.mubr.msk.f32.mxu1 %vm1346_vm2, %v1859_v2 }
 0x9e3   :  { %2660 = vmatmul.mubr.msk.f32.gmra.mxu1 %vm1346_vm2, %v1860_v39 }
 0xa9c   :  { %v2658_v60 = vpop.f32.mrf.mxu1 }
 0xa9d   :  { %v1964_v18 = vadd.f32 %v2658_v60, %v2302_v17 }
 0xa9e   :  { %v1958_v61 = vpop.f32.mrf.mxu1 }
 0xa9f   :  { %v1959_v62 = vadd.f32 %v2302_v17, %v1958_v61  ;;  %v1978_v29 = vmax.f32 %v1964_v18, 0.0 }
 0xaa1   :  { %v1977_v33 = vmax.f32 %v1959_v62, 0.0 }
 0xaa3   :  { %v2661_v45 = vpop.f32.mrf.mxu1  ;;  %2670 = vmatprep.mubr.msk.f32.mxu0 %vm866_vm0, %v1977_v33 }
 0xaa4   :  { %2671 = vmatmul.mubr.msk.f32.vlgmr.msra.gmra.mxu0 %vm866_vm0, %v1978_v29  ;;  %v1974_v32 = vadd.f32 %v2661_v45, %v2302_v17 }
 0xaa5   :  { %v1968_v40 = vpop.f32.mrf.mxu1  ;;  %2677 = vmatpush3.msra.mxu0 %v2096_v20 }
 0xaa6   :  { %v1969_v30 = vadd.f32 %v2302_v17, %v1968_v40  ;;  %v1980_v19 = vmax.f32 %v1974_v32, 0.0  ;;  %2678 = vmatprep.subr.mxu0 %v2095_v41 }
 0xaa7   :  { %2679 = vmatpush3.msra.mxu0 %v2095_v41 }
 0xaa8   :  { %v1979_v36 = vmax.f32 %v1969_v30, 0.0  ;;  %2680 = vmatprep.subr.mxu0 %v2094_v21 }
 0xaa9   :  { %2681 = vmatpush3.msra.mxu0 %v2094_v21 }
 0xaaa   :  { %2673 = vmatprep.mubr.msk.f32.mxu0 %vm866_vm0, %v1979_v36  ;;  %2682 = vmatprep.subr.mxu0 %v2093_v22 }
 0xaab   :  { %2674 = vmatmul.mubr.msk.f32.gmra.mxu0 %vm866_vm0, %v1980_v19 }
 0xaac   :  { %2683 = vmatpush3.msra.mxu0 %v2093_v22 }
 0xb64   :  { %v2672_v25 = vpop.f32.mrf.mxu0 }
 0xb65   :  { %v2076_v26 = vadd.f32 %v2672_v25, %v2307_v24 }
 0xb66   :  { %v2070_v58 = vpop.f32.mrf.mxu0 }
 0xb67   :  { %v2071_v27 = vadd.f32 %v2307_v24, %v2070_v58  ;;  %v2090_v49 = vmax.f32 %v2076_v26, 0.0 }
 0xb69   :  { %v2089_v28 = vmax.f32 %v2071_v27, 0.0 }
 0xb6b   :  { %v2675_v55 = vpop.f32.mrf.mxu0  ;;  %2684 = vmatprep.mubr.msk.f32.mxu0 %vm866_vm0, %v2089_v28 }
 0xb6c   :  { %2685 = vmatmul.mubr.msk.f32.vlgmr.msra.gmra.mxu0 %vm866_vm0, %v2090_v49  ;;  %v2086_v10 = vadd.f32 %v2675_v55, %v2307_v24 }
 0xb6d   :  { %v2080_v11 = vpop.f32.mrf.mxu0 }
 0xb6e   :  { %v2081_v1 = vadd.f32 %v2307_v24, %v2080_v11  ;;  %v2092_v13 = vmax.f32 %v2086_v10, 0.0 }
 0xb70   :  { %v2091_v12 = vmax.f32 %v2081_v1, 0.0 }
 0xb72   :  { %2687 = vmatprep.mubr.msk.f32.mxu0 %vm866_vm0, %v2091_v12 }
 0xb73   :  { %2688 = vmatmul.mubr.msk.f32.gmra.mxu0 %vm866_vm0, %v2092_v13 }
 0xc2c   :  { %v2686_v37 = vpop.f32.mrf.mxu0 }
 0xc2d   :  { %v2188_v31 = vadd.f32 %v2686_v37, %v2312_v14 }
 0xc2e   :  { %v2182_v34 = vpop.f32.mrf.mxu0 }
 0xc2f   :  { %2203 = vst.msk [vmem:[%s2238_s6 + $0x8] sm:$0xff] %vm2201_vm4, %v2188_v31  ;;  %v2183_v35 = vadd.f32 %v2312_v14, %v2182_v34 }
 0xc31   :  { %2202 = vst.msk [vmem:[%s2238_s6] sm:$0xff] %vm2201_vm4, %v2183_v35 }
 0xc33   :  { %v2689_v38 = vpop.f32.mrf.mxu0 }
 0xc34   :  { %v2198_v42 = vadd.f32 %v2689_v38, %v2312_v14 }
 0xc35   :  { %v2192_v43 = vpop.f32.mrf.mxu0 }
 0xc36   :  { %2205 = vst.msk [vmem:[%s2238_s6 + $0x18] sm:$0xff] %vm2201_vm4, %v2198_v42  ;;  %v2193_v47 = vadd.f32 %v2312_v14, %v2192_v43 }
 0xc38   :  { %2204 = vst.msk [vmem:[%s2238_s6 + $0x10] sm:$0xff] %vm2201_vm4, %v2193_v47 }

</bundles_post_ra>
